<compile_context>
chip_gen: v7x
topology: tpu7x:2x2x1
jax: 0.10.0
libtpu: 0.0.40
codegen_flags: <defaults>
</compile_context>

<pallas_src>
import functools

import jax
import jax.numpy as jnp
from jax.experimental import pallas as pl
from jax.experimental.pallas import tpu as pltpu


# ----------------------------- config ---------------------------------------
class Config:
    nheads = 2
    embdim = 32
    layers = 2          # 1 encoding + 1 decoding layer
    maxseq = 16
    vocab = 100         # padded to next multiple of 128 -> 128


def next_multiple_of_n(v, *, n):
    return next(x for x in range(n, int(v) + 1 + n, n) if x >= v)


RMS_EPS = float(jnp.finfo(jnp.float32).eps)   # matches torch.finfo(float32).eps
LN_EPS = 1e-5                                 # nn.LayerNorm default
ATTN_SCALE = 0.12                             # fixed scale from the reference module
NEG_MASK = -1e30                              # finite mask value (no exp(-inf-(-inf)) NaN risk)
MXU_DTYPE = jnp.bfloat16                      # matmul input dtype; accumulation stays f32


# ----------------------------- in-kernel helpers ------------------------------
def _rmsnorm(x):
    return x * jax.lax.rsqrt(jnp.mean(x * x, axis=-1, keepdims=True) + RMS_EPS)


def _layernorm(x, w, b):
    mean = jnp.mean(x, axis=-1, keepdims=True)
    var = jnp.mean((x - mean) ** 2, axis=-1, keepdims=True)
    return (x - mean) * jax.lax.rsqrt(var + LN_EPS) * w + b


# ----------------------------- attention branch kernel ------------------------
def _attn_block_kernel(x_ref, ln_w_ref, ln_b_ref, w_qkv_ref, w_proj_ref,
                       cos_ref, sin_ref, o_ref, *, nheads, pre_rmsnorm, scale):
    x = x_ref[0].astype(jnp.float32)                  # (T, C) residual stream
    T, C = x.shape
    Dh = C // nheads
    Dh2 = Dh // 2

    if pre_rmsnorm:                                   # fused `norm(word_embedding(x))`
        x = _rmsnorm(x)

    h = _layernorm(x, ln_w_ref[...], ln_b_ref[...])   # ln_1

    # qkv projection: one MXU matmul, bf16 inputs, f32 accumulation
    qkv = jnp.dot(h.astype(MXU_DTYPE), w_qkv_ref[...].astype(MXU_DTYPE),
                  preferred_element_type=jnp.float32)          # (T, 3C)

    cos = cos_ref[...]                                # (T, Dh/2)
    sin = sin_ref[...]

    row = jax.lax.broadcasted_iota(jnp.int32, (T, T), 0)
    col = jax.lax.broadcasted_iota(jnp.int32, (T, T), 1)
    causal = row >= col

    w_proj = w_proj_ref[...].astype(MXU_DTYPE)        # (C, C)
    dn = (((1,), (1,)), ((), ()))                     # contract last dims (q @ k^T)

    attn = jnp.zeros((T, C), jnp.float32)
    for hd in range(nheads):                          # static unroll (nheads small)
        q = qkv[:, hd * Dh:(hd + 1) * Dh]
        k = qkv[:, C + hd * Dh:C + (hd + 1) * Dh]
        v = qkv[:, 2 * C + hd * Dh:2 * C + (hd + 1) * Dh]

        q = _rmsnorm(q) * scale                       # fold attn scale into q (rotary is linear)
        k = _rmsnorm(k)

        # rotary, kept as two halves (avoids lane-dim concatenation in-kernel)
        q1, q2 = q[:, :Dh2], q[:, Dh2:]
        k1, k2 = k[:, :Dh2], k[:, Dh2:]
        rq1 = q1 * cos + q2 * sin
        rq2 = q2 * cos - q1 * sin
        rk1 = k1 * cos + k2 * sin
        rk2 = k2 * cos - k1 * sin

        # scores: rot(q) . rot(k) = rq1.rk1 + rq2.rk2
        s = (jax.lax.dot_general(rq1, rk1, dn, preferred_element_type=jnp.float32)
             + jax.lax.dot_general(rq2, rk2, dn, preferred_element_type=jnp.float32))
        s = jnp.where(causal, s, NEG_MASK)

        m = jnp.max(s, axis=-1, keepdims=True)
        p = jnp.exp(s - m)
        denom = jnp.sum(p, axis=-1, keepdims=True)
        y = jnp.dot(p, v, preferred_element_type=jnp.float32)
        y = y * pl.reciprocal(denom, approx=True)     # EUP reciprocal (free slot)

        # head's contribution to the output projection (avoids head concat)
        attn = attn + jnp.dot(y.astype(MXU_DTYPE), w_proj[hd * Dh:(hd + 1) * Dh, :],
                              preferred_element_type=jnp.float32)

    o_ref[0] = (x + attn).astype(o_ref.dtype)         # fused residual add
    # TODO(synk): for long sequences replace the (T,T) score tile with flash-style
    # KV tiling (online softmax) to stay inside v7x's 64 MiB VMEM.


def attn_block(x, bp, cos, sin, nheads, pre_rmsnorm):
    B, T, C = x.shape
    Dh2 = (C // nheads) // 2
    kern = functools.partial(_attn_block_kernel, nheads=nheads,
                             pre_rmsnorm=pre_rmsnorm, scale=ATTN_SCALE)
    return pl.pallas_call(
        kern,
        out_shape=jax.ShapeDtypeStruct((B, T, C), jnp.float32),
        grid_spec=pltpu.PrefetchScalarGridSpec(
            num_scalar_prefetch=0,
            grid=(B,),                                 # one step per batch, all heads per step
            in_specs=[pl.BlockSpec((1, T, C), lambda b: (b, 0, 0)),
                      pl.BlockSpec((1, C), lambda b: (0, 0)),
                      pl.BlockSpec((1, C), lambda b: (0, 0)),
                      pl.BlockSpec((C, 3 * C), lambda b: (0, 0)),
                      pl.BlockSpec((C, C), lambda b: (0, 0)),
                      pl.BlockSpec((T, Dh2), lambda b: (0, 0)),
                      pl.BlockSpec((T, Dh2), lambda b: (0, 0))],
            out_specs=pl.BlockSpec((1, T, C), lambda b: (b, 0, 0)),
        ),
        compiler_params=pltpu.CompilerParams(dimension_semantics=("parallel",)),
    )(x, bp["ln1_w"], bp["ln1_b"], bp["attn_w_qkv"], bp["attn_w_proj"], cos, sin)


# ----------------------------- MLP branch kernel -------------------------------
def _mlp_block_kernel(x_ref, ln_w_ref, ln_b_ref, w_fc_ref, w_proj_ref, o_ref):
    x = x_ref[...].astype(jnp.float32)                # (tm, C)
    h = _layernorm(x, ln_w_ref[...], ln_b_ref[...])   # ln_2
    h = jnp.dot(h.astype(MXU_DTYPE), w_fc_ref[...].astype(MXU_DTYPE),
                preferred_element_type=jnp.float32)
    h = jnp.maximum(h, 0.0) ** 2                      # relu(x)^2, f32 epilogue
    proj = jnp.dot(h.astype(MXU_DTYPE), w_proj_ref[...].astype(MXU_DTYPE),
                   preferred_element_type=jnp.float32)
    o_ref[...] = (x + proj).astype(o_ref.dtype)       # fused residual add


def mlp_block(x2d, bp, tm=None):
    M, C = x2d.shape
    Hd = bp["mlp_w_fc"].shape[1]
    tm = M if tm is None else tm                      # full-M tile: single grid step
    assert M % tm == 0
    return pl.pallas_call(
        _mlp_block_kernel,
        out_shape=jax.ShapeDtypeStruct((M, C), jnp.float32),
        grid_spec=pltpu.PrefetchScalarGridSpec(
            num_scalar_prefetch=0,
            grid=(M // tm,),
            in_specs=[pl.BlockSpec((tm, C), lambda i: (i, 0)),
                      pl.BlockSpec((1, C), lambda i: (0, 0)),
                      pl.BlockSpec((1, C), lambda i: (0, 0)),
                      pl.BlockSpec((C, Hd), lambda i: (0, 0)),
                      pl.BlockSpec((Hd, C), lambda i: (0, 0))],
            out_specs=pl.BlockSpec((tm, C), lambda i: (i, 0)),
        ),
        compiler_params=pltpu.CompilerParams(dimension_semantics=("parallel",)),
    )(x2d, bp["ln2_w"], bp["ln2_b"], bp["mlp_w_fc"], bp["mlp_w_proj"])


# ----------------------------- head kernel -------------------------------------
def _head_kernel(x_ref, ln_w_ref, ln_b_ref, w_ref, o_ref):
    x = x_ref[...].astype(jnp.float32)
    h = _rmsnorm(x)                                   # norm(x)
    h = _layernorm(h, ln_w_ref[...], ln_b_ref[...])   # ln_f
    logits = jnp.dot(h.astype(MXU_DTYPE), w_ref[...].astype(MXU_DTYPE),
                     preferred_element_type=jnp.float32)
    o_ref[...] = (30.0 * jax.nn.sigmoid(logits * (1.0 / 7.5))).astype(o_ref.dtype)


def lm_head(x2d, params, tm=None):
    M, C = x2d.shape
    V = params["lm_head"].shape[1]
    tm = M if tm is None else tm
    assert M % tm == 0
    # TODO(synk): at real GPT scale also tile the vocab (N) axis so the (C, V)
    # weight need not be fully VMEM-resident (v7x: 64 MiB VMEM).
    return pl.pallas_call(
        _head_kernel,
        out_shape=jax.ShapeDtypeStruct((M, V), jnp.float32),
        grid_spec=pltpu.PrefetchScalarGridSpec(
            num_scalar_prefetch=0,
            grid=(M // tm,),
            in_specs=[pl.BlockSpec((tm, C), lambda i: (i, 0)),
                      pl.BlockSpec((1, C), lambda i: (0, 0)),
                      pl.BlockSpec((1, C), lambda i: (0, 0)),
                      pl.BlockSpec((C, V), lambda i: (0, 0))],
            out_specs=pl.BlockSpec((tm, V), lambda i: (i, 0)),
        ),
        compiler_params=pltpu.CompilerParams(dimension_semantics=("parallel",)),
    )(x2d, params["ln_f_w"], params["ln_f_b"], params["lm_head"])


# ----------------------------- rotary tables (host/JAX side) -------------------
def make_rotary_tables(dim, max_seq_len):
    angular_freq = (1.0 / 1024.0) ** jnp.linspace(0.0, 1.0, dim // 4, dtype=jnp.float32)
    angular_freq = jnp.concatenate([angular_freq, jnp.zeros(dim // 4, jnp.float32)])
    t = jnp.arange(max_seq_len, dtype=jnp.float32)
    theta = t[:, None] * angular_freq[None, :]
    return jnp.cos(theta), jnp.sin(theta)             # each (max_seq_len, dim//2)


# ----------------------------- parameter init ---------------------------------
def casted_linear_init(key, in_f, out_f):
    # matches CastedLinear.reset_parameters (stored pre-transposed as (in, out))
    std = 0.5 * in_f ** (-0.5)
    bound = (3.0 ** 0.5) * std
    return jax.random.uniform(key, (in_f, out_f), jnp.float32, -bound, bound)


def init_params(key, cfg):
    vocab_padded = next_multiple_of_n(cfg.vocab, n=128)
    C, H = cfg.embdim, 4 * cfg.embdim
    keys = jax.random.split(key, 2 + 4 * cfg.layers)
    params = {
        "wte": jax.random.normal(keys[0], (vocab_padded, C), jnp.float32),
        "lm_head": casted_linear_init(keys[1], C, vocab_padded),
        "ln_f_w": jnp.ones((1, C), jnp.float32),
        "ln_f_b": jnp.zeros((1, C), jnp.float32),
        "skip_weights": jnp.ones((cfg.layers - cfg.layers // 2,), jnp.float32),
        "blocks": [],
    }
    for li in range(cfg.layers):
        k0, k1, k2, k3 = keys[2 + 4 * li: 6 + 4 * li]
        params["blocks"].append({
            "ln1_w": jnp.ones((1, C), jnp.float32),
            "ln1_b": jnp.zeros((1, C), jnp.float32),
            "attn_w_qkv": casted_linear_init(k0, C, 3 * C),
            "attn_w_proj": casted_linear_init(k1, C, C),
            "ln2_w": jnp.ones((1, C), jnp.float32),
            "ln2_b": jnp.zeros((1, C), jnp.float32),
            "mlp_w_fc": casted_linear_init(k2, C, H),
            "mlp_w_proj": casted_linear_init(k3, H, C),
        })
    return params


# ----------------------------- forward pass ------------------------------------
def gpt_forward(params, tokens, cfg, cos_full, sin_full):
    B, T = tokens.shape
    assert T <= cfg.maxseq
    C = cfg.embdim
    num_enc = cfg.layers // 2

    cos = cos_full[:T]
    sin = sin_full[:T]

    # embedding gather stays in XLA; its rms-norm is fused into block 0's kernel
    x = jnp.take(params["wte"], tokens, axis=0)       # (B, T, C)

    skips = []
    for i in range(cfg.layers):
        bp = params["blocks"][i]
        if i >= num_enc:
            # U-net skip add (single elementwise XLA op, left as glue)
            x = x + params["skip_weights"][i - num_enc] * skips.pop()
        x = attn_block(x, bp, cos, sin, cfg.nheads, pre_rmsnorm=(i == 0))
        x = mlp_block(x.reshape(B * T, C), bp).reshape(B, T, C)
        if i < num_enc:
            skips.append(x)

    logits = lm_head(x.reshape(B * T, C), params)     # fused rms + ln_f + matmul + sigmoid30
    vocab_padded = params["lm_head"].shape[1]
    return logits.reshape(B, T, vocab_padded)
    # TODO(synk): cross-entropy loss path (groundTruth) not implemented; forward returns logits only.


# ----------------------------- main --------------------------------------------
if __name__ == "__main__":
    cfg = Config()
    key = jax.random.PRNGKey(0)
    k_param, k_tok = jax.random.split(key)

    params = init_params(k_param, cfg)
    cos, sin = make_rotary_tables(cfg.embdim // cfg.nheads, cfg.maxseq)

    B, T = 2, 8
    tokens = jax.random.randint(k_tok, (B, T), 0, cfg.vocab, dtype=jnp.int32)

    @jax.jit
    def fwd(params, tokens, cos, sin):
        return gpt_forward(params, tokens, cfg, cos, sin)

    logits = fwd(params, tokens, cos, sin)
    logits = jax.block_until_ready(logits)

    vocab_padded = next_multiple_of_n(cfg.vocab, n=128)
    assert logits.shape == (B, T, vocab_padded)
    assert bool(jnp.all(jnp.isfinite(logits)))
    # sanity: 30 * sigmoid(.) must lie in (0, 30)
    assert bool(jnp.all(logits > 0.0)) and bool(jnp.all(logits < 30.0))
    print("KERNEL_OK")
</pallas_src>

<mosaic_0001>
module attributes {stable_mosaic.version = 11 : i64} {
  func.func @_attn_block_kernel(%arg0: i32, %arg1: memref<1x8x32xf32, #tpu.memory_space<vmem>>, %arg2: memref<1x32xf32, #tpu.memory_space<vmem>>, %arg3: memref<1x32xf32, #tpu.memory_space<vmem>>, %arg4: memref<32x96xf32, #tpu.memory_space<vmem>>, %arg5: memref<32x32xf32, #tpu.memory_space<vmem>>, %arg6: memref<8x8xf32, #tpu.memory_space<vmem>>, %arg7: memref<8x8xf32, #tpu.memory_space<vmem>>, %arg8: memref<1x8x32xf32, #tpu.memory_space<vmem>>) attributes {dimension_semantics = [#tpu.dimension_semantics<parallel>], iteration_bounds = array<i64: 2>, scalar_prefetch = 0 : i64, scratch_operands = 0 : i64, tpu.core_type = #tpu.core_type<tc>, window_params = [{transform_indices = @transform_0, window_bounds = array<i64: 1, 8, 32>}, {pipeline_mode = #tpu.pipeline_mode<synchronous>, transform_indices = @transform_1, window_bounds = array<i64: 1, 32>}, {pipeline_mode = #tpu.pipeline_mode<synchronous>, transform_indices = @transform_2, window_bounds = array<i64: 1, 32>}, {pipeline_mode = #tpu.pipeline_mode<synchronous>, transform_indices = @transform_3, window_bounds = array<i64: 32, 96>}, {pipeline_mode = #tpu.pipeline_mode<synchronous>, transform_indices = @transform_4, window_bounds = array<i64: 32, 32>}, {pipeline_mode = #tpu.pipeline_mode<synchronous>, transform_indices = @transform_5, window_bounds = array<i64: 8, 8>}, {pipeline_mode = #tpu.pipeline_mode<synchronous>, transform_indices = @transform_6, window_bounds = array<i64: 8, 8>}, {transform_indices = @transform_7, window_bounds = array<i64: 1, 8, 32>}]} {
    %c0 = arith.constant 0 : index
    %c0_0 = arith.constant 0 : index
    %c0_1 = arith.constant 0 : index
    %0 = vector.load %arg1[%c0, %c0_0, %c0_1] : memref<1x8x32xf32, #tpu.memory_space<vmem>>, vector<1x8x32xf32>
    %1 = vector.shape_cast %0 : vector<1x8x32xf32> to vector<8x32xf32>
    %c0_2 = arith.constant 0 : index
    %c0_3 = arith.constant 0 : index
    %2 = vector.load %arg2[%c0_2, %c0_3] : memref<1x32xf32, #tpu.memory_space<vmem>>, vector<1x32xf32>
    %c0_4 = arith.constant 0 : index
    %c0_5 = arith.constant 0 : index
    %3 = vector.load %arg3[%c0_4, %c0_5] : memref<1x32xf32, #tpu.memory_space<vmem>>, vector<1x32xf32>
    %cst = arith.constant dense<0.000000e+00> : vector<8xf32>
    %4 = vector.multi_reduction <add>, %1, %cst [1] : vector<8x32xf32> to vector<8xf32>
    %5 = vector.shape_cast %4 : vector<8xf32> to vector<8x1xf32>
    %cst_6 = arith.constant 3.200000e+01 : f32
    %6 = vector.broadcast %cst_6 : f32 to vector<8x1xf32>
    %7 = arith.divf %5, %6 : vector<8x1xf32>
    %8 = vector.broadcast %7 : vector<8x1xf32> to vector<8x32xf32>
    %9 = arith.subf %1, %8 : vector<8x32xf32>
    %10 = arith.mulf %9, %9 : vector<8x32xf32>
    %cst_7 = arith.constant dense<0.000000e+00> : vector<8xf32>
    %11 = vector.multi_reduction <add>, %10, %cst_7 [1] : vector<8x32xf32> to vector<8xf32>
    %12 = vector.shape_cast %11 : vector<8xf32> to vector<8x1xf32>
    %cst_8 = arith.constant 3.200000e+01 : f32
    %13 = vector.broadcast %cst_8 : f32 to vector<8x1xf32>
    %14 = arith.divf %12, %13 : vector<8x1xf32>
    %15 = vector.broadcast %7 : vector<8x1xf32> to vector<8x32xf32>
    %16 = arith.subf %1, %15 : vector<8x32xf32>
    %cst_9 = arith.constant 9.99999974E-6 : f32
    %17 = vector.broadcast %cst_9 : f32 to vector<8x1xf32>
    %18 = arith.addf %14, %17 : vector<8x1xf32>
    %19 = math.rsqrt %18 : vector<8x1xf32>
    %20 = vector.broadcast %19 : vector<8x1xf32> to vector<8x32xf32>
    %21 = arith.mulf %16, %20 : vector<8x32xf32>
    %22 = vector.broadcast %2 : vector<1x32xf32> to vector<8x32xf32>
    %23 = arith.mulf %21, %22 : vector<8x32xf32>
    %24 = vector.broadcast %3 : vector<1x32xf32> to vector<8x32xf32>
    %25 = arith.addf %23, %24 : vector<8x32xf32>
    %26 = arith.truncf %25 : vector<8x32xf32> to vector<8x32xbf16>
    %c0_10 = arith.constant 0 : index
    %c0_11 = arith.constant 0 : index
    %27 = vector.load %arg4[%c0_10, %c0_11] : memref<32x96xf32, #tpu.memory_space<vmem>>, vector<32x96xf32>
    %28 = arith.truncf %27 : vector<32x96xf32> to vector<32x96xbf16>
    %cst_12 = arith.constant dense<0.000000e+00> : vector<8x96xf32>
    %29 = tpu.matmul %26, %28, %cst_12 {dimension_numbers = #tpu.dot_dimension_numbers<[1], [0], [0], [1], [0, 0, 1, 1], [], []>} : vector<8x32xbf16>, vector<32x96xbf16>, vector<8x96xf32> -> vector<8x96xf32>
    %c0_13 = arith.constant 0 : index
    %c0_14 = arith.constant 0 : index
    %30 = vector.load %arg6[%c0_13, %c0_14] : memref<8x8xf32, #tpu.memory_space<vmem>>, vector<8x8xf32>
    %c0_15 = arith.constant 0 : index
    %c0_16 = arith.constant 0 : index
    %31 = vector.load %arg7[%c0_15, %c0_16] : memref<8x8xf32, #tpu.memory_space<vmem>>, vector<8x8xf32>
    %32 = tpu.iota {dimensions = array<i32: 0>} : vector<8x8xi32>
    %33 = tpu.iota {dimensions = array<i32: 1>} : vector<8x8xi32>
    %34 = arith.cmpi sge, %32, %33 : vector<8x8xi32>
    %c0_17 = arith.constant 0 : index
    %c0_18 = arith.constant 0 : index
    %35 = vector.load %arg5[%c0_17, %c0_18] : memref<32x32xf32, #tpu.memory_space<vmem>>, vector<32x32xf32>
    %36 = arith.truncf %35 : vector<32x32xf32> to vector<32x32xbf16>
    %cst_19 = arith.constant 0.000000e+00 : f32
    %37 = vector.broadcast %cst_19 : f32 to vector<8x32xf32>
    %38 = vector.extract_strided_slice %29 {offsets = [0, 0], sizes = [8, 16], strides = [1, 1]} : vector<8x96xf32> to vector<8x16xf32>
    %39 = vector.extract_strided_slice %29 {offsets = [0, 32], sizes = [8, 16], strides = [1, 1]} : vector<8x96xf32> to vector<8x16xf32>
    %40 = vector.extract_strided_slice %29 {offsets = [0, 64], sizes = [8, 16], strides = [1, 1]} : vector<8x96xf32> to vector<8x16xf32>
    %41 = arith.mulf %38, %38 : vector<8x16xf32>
    %cst_20 = arith.constant dense<0.000000e+00> : vector<8xf32>
    %42 = vector.multi_reduction <add>, %41, %cst_20 [1] : vector<8x16xf32> to vector<8xf32>
    %43 = vector.shape_cast %42 : vector<8xf32> to vector<8x1xf32>
    %cst_21 = arith.constant 1.600000e+01 : f32
    %44 = vector.broadcast %cst_21 : f32 to vector<8x1xf32>
    %45 = arith.divf %43, %44 : vector<8x1xf32>
    %cst_22 = arith.constant 1.1920929E-7 : f32
    %46 = vector.broadcast %cst_22 : f32 to vector<8x1xf32>
    %47 = arith.addf %45, %46 : vector<8x1xf32>
    %48 = math.rsqrt %47 : vector<8x1xf32>
    %49 = vector.broadcast %48 : vector<8x1xf32> to vector<8x16xf32>
    %50 = arith.mulf %38, %49 : vector<8x16xf32>
    %cst_23 = arith.constant 1.200000e-01 : f32
    %51 = vector.broadcast %cst_23 : f32 to vector<8x16xf32>
    %52 = arith.mulf %50, %51 : vector<8x16xf32>
    %53 = arith.mulf %39, %39 : vector<8x16xf32>
    %cst_24 = arith.constant dense<0.000000e+00> : vector<8xf32>
    %54 = vector.multi_reduction <add>, %53, %cst_24 [1] : vector<8x16xf32> to vector<8xf32>
    %55 = vector.shape_cast %54 : vector<8xf32> to vector<8x1xf32>
    %cst_25 = arith.constant 1.600000e+01 : f32
    %56 = vector.broadcast %cst_25 : f32 to vector<8x1xf32>
    %57 = arith.divf %55, %56 : vector<8x1xf32>
    %cst_26 = arith.constant 1.1920929E-7 : f32
    %58 = vector.broadcast %cst_26 : f32 to vector<8x1xf32>
    %59 = arith.addf %57, %58 : vector<8x1xf32>
    %60 = math.rsqrt %59 : vector<8x1xf32>
    %61 = vector.broadcast %60 : vector<8x1xf32> to vector<8x16xf32>
    %62 = arith.mulf %39, %61 : vector<8x16xf32>
    %63 = vector.extract_strided_slice %52 {offsets = [0, 0], sizes = [8, 8], strides = [1, 1]} : vector<8x16xf32> to vector<8x8xf32>
    %64 = vector.extract_strided_slice %52 {offsets = [0, 8], sizes = [8, 8], strides = [1, 1]} : vector<8x16xf32> to vector<8x8xf32>
    %65 = vector.extract_strided_slice %62 {offsets = [0, 0], sizes = [8, 8], strides = [1, 1]} : vector<8x16xf32> to vector<8x8xf32>
    %66 = vector.extract_strided_slice %62 {offsets = [0, 8], sizes = [8, 8], strides = [1, 1]} : vector<8x16xf32> to vector<8x8xf32>
    %67 = arith.mulf %63, %30 : vector<8x8xf32>
    %68 = arith.mulf %64, %31 : vector<8x8xf32>
    %69 = arith.addf %67, %68 : vector<8x8xf32>
    %70 = arith.mulf %64, %30 : vector<8x8xf32>
    %71 = arith.mulf %63, %31 : vector<8x8xf32>
    %72 = arith.subf %70, %71 : vector<8x8xf32>
    %73 = arith.mulf %65, %30 : vector<8x8xf32>
    %74 = arith.mulf %66, %31 : vector<8x8xf32>
    %75 = arith.addf %73, %74 : vector<8x8xf32>
    %76 = arith.mulf %66, %30 : vector<8x8xf32>
    %77 = arith.mulf %65, %31 : vector<8x8xf32>
    %78 = arith.subf %76, %77 : vector<8x8xf32>
    %cst_27 = arith.constant dense<0.000000e+00> : vector<8x8xf32>
    %79 = tpu.matmul %69, %75, %cst_27 {dimension_numbers = #tpu.dot_dimension_numbers<[1], [1], [0], [0], [0, 0, 1, 0], [], []>} : vector<8x8xf32>, vector<8x8xf32>, vector<8x8xf32> -> vector<8x8xf32>
    %cst_28 = arith.constant dense<0.000000e+00> : vector<8x8xf32>
    %80 = tpu.matmul %72, %78, %cst_28 {dimension_numbers = #tpu.dot_dimension_numbers<[1], [1], [0], [0], [0, 0, 1, 0], [], []>} : vector<8x8xf32>, vector<8x8xf32>, vector<8x8xf32> -> vector<8x8xf32>
    %81 = arith.addf %79, %80 : vector<8x8xf32>
    %cst_29 = arith.constant -1.000000e+30 : f32
    %82 = vector.broadcast %cst_29 : f32 to vector<8x8xf32>
    %83 = arith.select %34, %81, %82 : vector<8x8xi1>, vector<8x8xf32>
    %cst_30 = arith.constant dense<0xFF800000> : vector<8xf32>
    %84 = vector.multi_reduction <maximumf>, %83, %cst_30 [1] : vector<8x8xf32> to vector<8xf32>
    %85 = vector.shape_cast %84 : vector<8xf32> to vector<8x1xf32>
    %86 = vector.broadcast %85 : vector<8x1xf32> to vector<8x8xf32>
    %87 = arith.subf %83, %86 : vector<8x8xf32>
    %88 = math.exp %87 : vector<8x8xf32>
    %cst_31 = arith.constant dense<0.000000e+00> : vector<8xf32>
    %89 = vector.multi_reduction <add>, %88, %cst_31 [1] : vector<8x8xf32> to vector<8xf32>
    %90 = vector.shape_cast %89 : vector<8xf32> to vector<8x1xf32>
    %cst_32 = arith.constant dense<0.000000e+00> : vector<8x16xf32>
    %91 = tpu.matmul %88, %40, %cst_32 {dimension_numbers = #tpu.dot_dimension_numbers<[1], [0], [0], [1], [0, 0, 1, 1], [], []>} : vector<8x8xf32>, vector<8x16xf32>, vector<8x16xf32> -> vector<8x16xf32>
    %92 = tpu.reciprocal %90 {approx = true} : vector<8x1xf32> -> vector<8x1xf32>
    %93 = vector.broadcast %92 : vector<8x1xf32> to vector<8x16xf32>
    %94 = arith.mulf %91, %93 : vector<8x16xf32>
    %95 = arith.truncf %94 : vector<8x16xf32> to vector<8x16xbf16>
    %96 = vector.extract_strided_slice %36 {offsets = [0, 0], sizes = [16, 32], strides = [1, 1]} : vector<32x32xbf16> to vector<16x32xbf16>
    %cst_33 = arith.constant dense<0.000000e+00> : vector<8x32xf32>
    %97 = tpu.matmul %95, %96, %cst_33 {dimension_numbers = #tpu.dot_dimension_numbers<[1], [0], [0], [1], [0, 0, 1, 1], [], []>} : vector<8x16xbf16>, vector<16x32xbf16>, vector<8x32xf32> -> vector<8x32xf32>
    %98 = arith.addf %37, %97 : vector<8x32xf32>
    %99 = vector.extract_strided_slice %29 {offsets = [0, 16], sizes = [8, 16], strides = [1, 1]} : vector<8x96xf32> to vector<8x16xf32>
    %100 = vector.extract_strided_slice %29 {offsets = [0, 48], sizes = [8, 16], strides = [1, 1]} : vector<8x96xf32> to vector<8x16xf32>
    %101 = vector.extract_strided_slice %29 {offsets = [0, 80], sizes = [8, 16], strides = [1, 1]} : vector<8x96xf32> to vector<8x16xf32>
    %102 = arith.mulf %99, %99 : vector<8x16xf32>
    %cst_34 = arith.constant dense<0.000000e+00> : vector<8xf32>
    %103 = vector.multi_reduction <add>, %102, %cst_34 [1] : vector<8x16xf32> to vector<8xf32>
    %104 = vector.shape_cast %103 : vector<8xf32> to vector<8x1xf32>
    %cst_35 = arith.constant 1.600000e+01 : f32
    %105 = vector.broadcast %cst_35 : f32 to vector<8x1xf32>
    %106 = arith.divf %104, %105 : vector<8x1xf32>
    %cst_36 = arith.constant 1.1920929E-7 : f32
    %107 = vector.broadcast %cst_36 : f32 to vector<8x1xf32>
    %108 = arith.addf %106, %107 : vector<8x1xf32>
    %109 = math.rsqrt %108 : vector<8x1xf32>
    %110 = vector.broadcast %109 : vector<8x1xf32> to vector<8x16xf32>
    %111 = arith.mulf %99, %110 : vector<8x16xf32>
    %cst_37 = arith.constant 1.200000e-01 : f32
    %112 = vector.broadcast %cst_37 : f32 to vector<8x16xf32>
    %113 = arith.mulf %111, %112 : vector<8x16xf32>
    %114 = arith.mulf %100, %100 : vector<8x16xf32>
    %cst_38 = arith.constant dense<0.000000e+00> : vector<8xf32>
    %115 = vector.multi_reduction <add>, %114, %cst_38 [1] : vector<8x16xf32> to vector<8xf32>
    %116 = vector.shape_cast %115 : vector<8xf32> to vector<8x1xf32>
    %cst_39 = arith.constant 1.600000e+01 : f32
    %117 = vector.broadcast %cst_39 : f32 to vector<8x1xf32>
    %118 = arith.divf %116, %117 : vector<8x1xf32>
    %cst_40 = arith.constant 1.1920929E-7 : f32
    %119 = vector.broadcast %cst_40 : f32 to vector<8x1xf32>
    %120 = arith.addf %118, %119 : vector<8x1xf32>
    %121 = math.rsqrt %120 : vector<8x1xf32>
    %122 = vector.broadcast %121 : vector<8x1xf32> to vector<8x16xf32>
    %123 = arith.mulf %100, %122 : vector<8x16xf32>
    %124 = vector.extract_strided_slice %113 {offsets = [0, 0], sizes = [8, 8], strides = [1, 1]} : vector<8x16xf32> to vector<8x8xf32>
    %125 = vector.extract_strided_slice %113 {offsets = [0, 8], sizes = [8, 8], strides = [1, 1]} : vector<8x16xf32> to vector<8x8xf32>
    %126 = vector.extract_strided_slice %123 {offsets = [0, 0], sizes = [8, 8], strides = [1, 1]} : vector<8x16xf32> to vector<8x8xf32>
    %127 = vector.extract_strided_slice %123 {offsets = [0, 8], sizes = [8, 8], strides = [1, 1]} : vector<8x16xf32> to vector<8x8xf32>
    %128 = arith.mulf %124, %30 : vector<8x8xf32>
    %129 = arith.mulf %125, %31 : vector<8x8xf32>
    %130 = arith.addf %128, %129 : vector<8x8xf32>
    %131 = arith.mulf %125, %30 : vector<8x8xf32>
    %132 = arith.mulf %124, %31 : vector<8x8xf32>
    %133 = arith.subf %131, %132 : vector<8x8xf32>
    %134 = arith.mulf %126, %30 : vector<8x8xf32>
    %135 = arith.mulf %127, %31 : vector<8x8xf32>
    %136 = arith.addf %134, %135 : vector<8x8xf32>
    %137 = arith.mulf %127, %30 : vector<8x8xf32>
    %138 = arith.mulf %126, %31 : vector<8x8xf32>
    %139 = arith.subf %137, %138 : vector<8x8xf32>
    %cst_41 = arith.constant dense<0.000000e+00> : vector<8x8xf32>
    %140 = tpu.matmul %130, %136, %cst_41 {dimension_numbers = #tpu.dot_dimension_numbers<[1], [1], [0], [0], [0, 0, 1, 0], [], []>} : vector<8x8xf32>, vector<8x8xf32>, vector<8x8xf32> -> vector<8x8xf32>
    %cst_42 = arith.constant dense<0.000000e+00> : vector<8x8xf32>
    %141 = tpu.matmul %133, %139, %cst_42 {dimension_numbers = #tpu.dot_dimension_numbers<[1], [1], [0], [0], [0, 0, 1, 0], [], []>} : vector<8x8xf32>, vector<8x8xf32>, vector<8x8xf32> -> vector<8x8xf32>
    %142 = arith.addf %140, %141 : vector<8x8xf32>
    %cst_43 = arith.constant -1.000000e+30 : f32
    %143 = vector.broadcast %cst_43 : f32 to vector<8x8xf32>
    %144 = arith.select %34, %142, %143 : vector<8x8xi1>, vector<8x8xf32>
    %cst_44 = arith.constant dense<0xFF800000> : vector<8xf32>
    %145 = vector.multi_reduction <maximumf>, %144, %cst_44 [1] : vector<8x8xf32> to vector<8xf32>
    %146 = vector.shape_cast %145 : vector<8xf32> to vector<8x1xf32>
    %147 = vector.broadcast %146 : vector<8x1xf32> to vector<8x8xf32>
    %148 = arith.subf %144, %147 : vector<8x8xf32>
    %149 = math.exp %148 : vector<8x8xf32>
    %cst_45 = arith.constant dense<0.000000e+00> : vector<8xf32>
    %150 = vector.multi_reduction <add>, %149, %cst_45 [1] : vector<8x8xf32> to vector<8xf32>
    %151 = vector.shape_cast %150 : vector<8xf32> to vector<8x1xf32>
    %cst_46 = arith.constant dense<0.000000e+00> : vector<8x16xf32>
    %152 = tpu.matmul %149, %101, %cst_46 {dimension_numbers = #tpu.dot_dimension_numbers<[1], [0], [0], [1], [0, 0, 1, 1], [], []>} : vector<8x8xf32>, vector<8x16xf32>, vector<8x16xf32> -> vector<8x16xf32>
    %153 = tpu.reciprocal %151 {approx = true} : vector<8x1xf32> -> vector<8x1xf32>
    %154 = vector.broadcast %153 : vector<8x1xf32> to vector<8x16xf32>
    %155 = arith.mulf %152, %154 : vector<8x16xf32>
    %156 = arith.truncf %155 : vector<8x16xf32> to vector<8x16xbf16>
    %157 = vector.extract_strided_slice %36 {offsets = [16, 0], sizes = [16, 32], strides = [1, 1]} : vector<32x32xbf16> to vector<16x32xbf16>
    %cst_47 = arith.constant dense<0.000000e+00> : vector<8x32xf32>
    %158 = tpu.matmul %156, %157, %cst_47 {dimension_numbers = #tpu.dot_dimension_numbers<[1], [0], [0], [1], [0, 0, 1, 1], [], []>} : vector<8x16xbf16>, vector<16x32xbf16>, vector<8x32xf32> -> vector<8x32xf32>
    %159 = arith.addf %98, %158 : vector<8x32xf32>
    %160 = arith.addf %1, %159 : vector<8x32xf32>
    %c0_48 = arith.constant 0 : index
    %c0_49 = arith.constant 0 : index
    %c0_50 = arith.constant 0 : index
    %161 = vector.load %arg8[%c0_48, %c0_49, %c0_50] : memref<1x8x32xf32, #tpu.memory_space<vmem>>, vector<1x8x32xf32>
    %162 = vector.shape_cast %161 : vector<1x8x32xf32> to vector<8x32xf32>
    %163 = vector.shape_cast %160 : vector<8x32xf32> to vector<1x8x32xf32>
    tpu.vector_store %arg8[%c0_48, %c0_49, %c0_50], %163 {strides = array<i32>} : memref<1x8x32xf32, #tpu.memory_space<vmem>>, vector<1x8x32xf32>,
    return
  }
  func.func @transform_0(%arg0: i32) -> (i32, i32, i32) {
    %c0_i32 = arith.constant 0 : i32
    %c0_i32_0 = arith.constant 0 : i32
    %c0_i32_1 = arith.constant 0 : i32
    return %arg0, %c0_i32, %c0_i32_0 : i32, i32, i32
  }
  func.func @transform_1(%arg0: i32) -> (i32, i32) {
    %c0_i32 = arith.constant 0 : i32
    %c0_i32_0 = arith.constant 0 : i32
    %c0_i32_1 = arith.constant 0 : i32
    return %c0_i32, %c0_i32_0 : i32, i32
  }
  func.func @transform_2(%arg0: i32) -> (i32, i32) {
    %c0_i32 = arith.constant 0 : i32
    %c0_i32_0 = arith.constant 0 : i32
    %c0_i32_1 = arith.constant 0 : i32
    return %c0_i32, %c0_i32_0 : i32, i32
  }
  func.func @transform_3(%arg0: i32) -> (i32, i32) {
    %c0_i32 = arith.constant 0 : i32
    %c0_i32_0 = arith.constant 0 : i32
    %c0_i32_1 = arith.constant 0 : i32
    return %c0_i32, %c0_i32_0 : i32, i32
  }
  func.func @transform_4(%arg0: i32) -> (i32, i32) {
    %c0_i32 = arith.constant 0 : i32
    %c0_i32_0 = arith.constant 0 : i32
    %c0_i32_1 = arith.constant 0 : i32
    return %c0_i32, %c0_i32_0 : i32, i32
  }
  func.func @transform_5(%arg0: i32) -> (i32, i32) {
    %c0_i32 = arith.constant 0 : i32
    %c0_i32_0 = arith.constant 0 : i32
    %c0_i32_1 = arith.constant 0 : i32
    return %c0_i32, %c0_i32_0 : i32, i32
  }
  func.func @transform_6(%arg0: i32) -> (i32, i32) {
    %c0_i32 = arith.constant 0 : i32
    %c0_i32_0 = arith.constant 0 : i32
    %c0_i32_1 = arith.constant 0 : i32
    return %c0_i32, %c0_i32_0 : i32, i32
  }
  func.func @transform_7(%arg0: i32) -> (i32, i32, i32) {
    %c0_i32 = arith.constant 0 : i32
    %c0_i32_0 = arith.constant 0 : i32
    %c0_i32_1 = arith.constant 0 : i32
    return %arg0, %c0_i32, %c0_i32_0 : i32, i32, i32
  }
}

module attributes {stable_mosaic.version = 11 : i64} {
  func.func @_head_kernel(%arg0: i32, %arg1: memref<16x32xf32, #tpu.memory_space<vmem>>, %arg2: memref<1x32xf32, #tpu.memory_space<vmem>>, %arg3: memref<1x32xf32, #tpu.memory_space<vmem>>, %arg4: memref<32x128xf32, #tpu.memory_space<vmem>>, %arg5: memref<16x128xf32, #tpu.memory_space<vmem>>) attributes {dimension_semantics = [#tpu.dimension_semantics<parallel>], iteration_bounds = array<i64: 1>, scalar_prefetch = 0 : i64, scratch_operands = 0 : i64, tpu.core_type = #tpu.core_type<tc>, window_params = [{transform_indices = @transform_0, window_bounds = array<i64: 16, 32>}, {pipeline_mode = #tpu.pipeline_mode<synchronous>, transform_indices = @transform_1, window_bounds = array<i64: 1, 32>}, {pipeline_mode = #tpu.pipeline_mode<synchronous>, transform_indices = @transform_2, window_bounds = array<i64: 1, 32>}, {pipeline_mode = #tpu.pipeline_mode<synchronous>, transform_indices = @transform_3, window_bounds = array<i64: 32, 128>}, {transform_indices = @transform_4, window_bounds = array<i64: 16, 128>}]} {
    %c0 = arith.constant 0 : index
    %c0_0 = arith.constant 0 : index
    %0 = vector.load %arg1[%c0, %c0_0] : memref<16x32xf32, #tpu.memory_space<vmem>>, vector<16x32xf32>
    %1 = arith.mulf %0, %0 : vector<16x32xf32>
    %cst = arith.constant dense<0.000000e+00> : vector<16xf32>
    %2 = vector.multi_reduction <add>, %1, %cst [1] : vector<16x32xf32> to vector<16xf32>
    %3 = vector.shape_cast %2 : vector<16xf32> to vector<16x1xf32>
    %cst_1 = arith.constant 3.200000e+01 : f32
    %4 = vector.broadcast %cst_1 : f32 to vector<16x1xf32>
    %5 = arith.divf %3, %4 : vector<16x1xf32>
    %cst_2 = arith.constant 1.1920929E-7 : f32
    %6 = vector.broadcast %cst_2 : f32 to vector<16x1xf32>
    %7 = arith.addf %5, %6 : vector<16x1xf32>
    %8 = math.rsqrt %7 : vector<16x1xf32>
    %9 = vector.broadcast %8 : vector<16x1xf32> to vector<16x32xf32>
    %10 = arith.mulf %0, %9 : vector<16x32xf32>
    %c0_3 = arith.constant 0 : index
    %c0_4 = arith.constant 0 : index
    %11 = vector.load %arg2[%c0_3, %c0_4] : memref<1x32xf32, #tpu.memory_space<vmem>>, vector<1x32xf32>
    %c0_5 = arith.constant 0 : index
    %c0_6 = arith.constant 0 : index
    %12 = vector.load %arg3[%c0_5, %c0_6] : memref<1x32xf32, #tpu.memory_space<vmem>>, vector<1x32xf32>
    %cst_7 = arith.constant dense<0.000000e+00> : vector<16xf32>
    %13 = vector.multi_reduction <add>, %10, %cst_7 [1] : vector<16x32xf32> to vector<16xf32>
    %14 = vector.shape_cast %13 : vector<16xf32> to vector<16x1xf32>
    %cst_8 = arith.constant 3.200000e+01 : f32
    %15 = vector.broadcast %cst_8 : f32 to vector<16x1xf32>
    %16 = arith.divf %14, %15 : vector<16x1xf32>
    %17 = vector.broadcast %16 : vector<16x1xf32> to vector<16x32xf32>
    %18 = arith.subf %10, %17 : vector<16x32xf32>
    %19 = arith.mulf %18, %18 : vector<16x32xf32>
    %cst_9 = arith.constant dense<0.000000e+00> : vector<16xf32>
    %20 = vector.multi_reduction <add>, %19, %cst_9 [1] : vector<16x32xf32> to vector<16xf32>
    %21 = vector.shape_cast %20 : vector<16xf32> to vector<16x1xf32>
    %cst_10 = arith.constant 3.200000e+01 : f32
    %22 = vector.broadcast %cst_10 : f32 to vector<16x1xf32>
    %23 = arith.divf %21, %22 : vector<16x1xf32>
    %24 = vector.broadcast %16 : vector<16x1xf32> to vector<16x32xf32>
    %25 = arith.subf %10, %24 : vector<16x32xf32>
    %cst_11 = arith.constant 9.99999974E-6 : f32
    %26 = vector.broadcast %cst_11 : f32 to vector<16x1xf32>
    %27 = arith.addf %23, %26 : vector<16x1xf32>
    %28 = math.rsqrt %27 : vector<16x1xf32>
    %29 = vector.broadcast %28 : vector<16x1xf32> to vector<16x32xf32>
    %30 = arith.mulf %25, %29 : vector<16x32xf32>
    %31 = vector.broadcast %11 : vector<1x32xf32> to vector<16x32xf32>
    %32 = arith.mulf %30, %31 : vector<16x32xf32>
    %33 = vector.broadcast %12 : vector<1x32xf32> to vector<16x32xf32>
    %34 = arith.addf %32, %33 : vector<16x32xf32>
    %35 = arith.truncf %34 : vector<16x32xf32> to vector<16x32xbf16>
    %c0_12 = arith.constant 0 : index
    %c0_13 = arith.constant 0 : index
    %36 = vector.load %arg4[%c0_12, %c0_13] : memref<32x128xf32, #tpu.memory_space<vmem>>, vector<32x128xf32>
    %37 = arith.truncf %36 : vector<32x128xf32> to vector<32x128xbf16>
    %cst_14 = arith.constant dense<0.000000e+00> : vector<16x128xf32>
    %38 = tpu.matmul %35, %37, %cst_14 {dimension_numbers = #tpu.dot_dimension_numbers<[1], [0], [0], [1], [0, 0, 1, 1], [], []>} : vector<16x32xbf16>, vector<32x128xbf16>, vector<16x128xf32> -> vector<16x128xf32>
    %cst_15 = arith.constant 0.13333334 : f32
    %39 = vector.broadcast %cst_15 : f32 to vector<16x128xf32>
    %40 = arith.mulf %38, %39 : vector<16x128xf32>
    %41 = arith.negf %40 : vector<16x128xf32>
    %42 = math.exp %41 : vector<16x128xf32>
    %cst_16 = arith.constant 1.000000e+00 : f32
    %43 = vector.broadcast %cst_16 : f32 to vector<16x128xf32>
    %44 = arith.addf %43, %42 : vector<16x128xf32>
    %45 = arith.divf %43, %44 : vector<16x128xf32>
    %cst_17 = arith.constant 3.000000e+01 : f32
    %46 = vector.broadcast %cst_17 : f32 to vector<16x128xf32>
    %47 = arith.mulf %46, %45 : vector<16x128xf32>
    %c0_18 = arith.constant 0 : index
    %c0_19 = arith.constant 0 : index
    %48 = vector.load %arg5[%c0_18, %c0_19] : memref<16x128xf32, #tpu.memory_space<vmem>>, vector<16x128xf32>
    tpu.vector_store %arg5[%c0_18, %c0_19], %47 {strides = array<i32>} : memref<16x128xf32, #tpu.memory_space<vmem>>, vector<16x128xf32>,
    return
  }
  func.func @transform_0(%arg0: i32) -> (i32, i32) {
    %c0_i32 = arith.constant 0 : i32
    %c0_i32_0 = arith.constant 0 : i32
    return %arg0, %c0_i32 : i32, i32
  }
  func.func @transform_1(%arg0: i32) -> (i32, i32) {
    %c0_i32 = arith.constant 0 : i32
    %c0_i32_0 = arith.constant 0 : i32
    %c0_i32_1 = arith.constant 0 : i32
    return %c0_i32, %c0_i32_0 : i32, i32
  }
  func.func @transform_2(%arg0: i32) -> (i32, i32) {
    %c0_i32 = arith.constant 0 : i32
    %c0_i32_0 = arith.constant 0 : i32
    %c0_i32_1 = arith.constant 0 : i32
    return %c0_i32, %c0_i32_0 : i32, i32
  }
  func.func @transform_3(%arg0: i32) -> (i32, i32) {
    %c0_i32 = arith.constant 0 : i32
    %c0_i32_0 = arith.constant 0 : i32
    %c0_i32_1 = arith.constant 0 : i32
    return %c0_i32, %c0_i32_0 : i32, i32
  }
  func.func @transform_4(%arg0: i32) -> (i32, i32) {
    %c0_i32 = arith.constant 0 : i32
    %c0_i32_0 = arith.constant 0 : i32
    return %arg0, %c0_i32 : i32, i32
  }
}

module attributes {stable_mosaic.version = 11 : i64} {
  func.func @_attn_block_kernel(%arg0: i32, %arg1: memref<1x8x32xf32, #tpu.memory_space<vmem>>, %arg2: memref<1x32xf32, #tpu.memory_space<vmem>>, %arg3: memref<1x32xf32, #tpu.memory_space<vmem>>, %arg4: memref<32x96xf32, #tpu.memory_space<vmem>>, %arg5: memref<32x32xf32, #tpu.memory_space<vmem>>, %arg6: memref<8x8xf32, #tpu.memory_space<vmem>>, %arg7: memref<8x8xf32, #tpu.memory_space<vmem>>, %arg8: memref<1x8x32xf32, #tpu.memory_space<vmem>>) attributes {dimension_semantics = [#tpu.dimension_semantics<parallel>], iteration_bounds = array<i64: 2>, scalar_prefetch = 0 : i64, scratch_operands = 0 : i64, tpu.core_type = #tpu.core_type<tc>, window_params = [{transform_indices = @transform_0, window_bounds = array<i64: 1, 8, 32>}, {pipeline_mode = #tpu.pipeline_mode<synchronous>, transform_indices = @transform_1, window_bounds = array<i64: 1, 32>}, {pipeline_mode = #tpu.pipeline_mode<synchronous>, transform_indices = @transform_2, window_bounds = array<i64: 1, 32>}, {pipeline_mode = #tpu.pipeline_mode<synchronous>, transform_indices = @transform_3, window_bounds = array<i64: 32, 96>}, {pipeline_mode = #tpu.pipeline_mode<synchronous>, transform_indices = @transform_4, window_bounds = array<i64: 32, 32>}, {pipeline_mode = #tpu.pipeline_mode<synchronous>, transform_indices = @transform_5, window_bounds = array<i64: 8, 8>}, {pipeline_mode = #tpu.pipeline_mode<synchronous>, transform_indices = @transform_6, window_bounds = array<i64: 8, 8>}, {transform_indices = @transform_7, window_bounds = array<i64: 1, 8, 32>}]} {
    %c0 = arith.constant 0 : index
    %c0_0 = arith.constant 0 : index
    %c0_1 = arith.constant 0 : index
    %0 = vector.load %arg1[%c0, %c0_0, %c0_1] : memref<1x8x32xf32, #tpu.memory_space<vmem>>, vector<1x8x32xf32>
    %1 = vector.shape_cast %0 : vector<1x8x32xf32> to vector<8x32xf32>
    %2 = arith.mulf %1, %1 : vector<8x32xf32>
    %cst = arith.constant dense<0.000000e+00> : vector<8xf32>
    %3 = vector.multi_reduction <add>, %2, %cst [1] : vector<8x32xf32> to vector<8xf32>
    %4 = vector.shape_cast %3 : vector<8xf32> to vector<8x1xf32>
    %cst_2 = arith.constant 3.200000e+01 : f32
    %5 = vector.broadcast %cst_2 : f32 to vector<8x1xf32>
    %6 = arith.divf %4, %5 : vector<8x1xf32>
    %cst_3 = arith.constant 1.1920929E-7 : f32
    %7 = vector.broadcast %cst_3 : f32 to vector<8x1xf32>
    %8 = arith.addf %6, %7 : vector<8x1xf32>
    %9 = math.rsqrt %8 : vector<8x1xf32>
    %10 = vector.broadcast %9 : vector<8x1xf32> to vector<8x32xf32>
    %11 = arith.mulf %1, %10 : vector<8x32xf32>
    %c0_4 = arith.constant 0 : index
    %c0_5 = arith.constant 0 : index
    %12 = vector.load %arg2[%c0_4, %c0_5] : memref<1x32xf32, #tpu.memory_space<vmem>>, vector<1x32xf32>
    %c0_6 = arith.constant 0 : index
    %c0_7 = arith.constant 0 : index
    %13 = vector.load %arg3[%c0_6, %c0_7] : memref<1x32xf32, #tpu.memory_space<vmem>>, vector<1x32xf32>
    %cst_8 = arith.constant dense<0.000000e+00> : vector<8xf32>
    %14 = vector.multi_reduction <add>, %11, %cst_8 [1] : vector<8x32xf32> to vector<8xf32>
    %15 = vector.shape_cast %14 : vector<8xf32> to vector<8x1xf32>
    %cst_9 = arith.constant 3.200000e+01 : f32
    %16 = vector.broadcast %cst_9 : f32 to vector<8x1xf32>
    %17 = arith.divf %15, %16 : vector<8x1xf32>
    %18 = vector.broadcast %17 : vector<8x1xf32> to vector<8x32xf32>
    %19 = arith.subf %11, %18 : vector<8x32xf32>
    %20 = arith.mulf %19, %19 : vector<8x32xf32>
    %cst_10 = arith.constant dense<0.000000e+00> : vector<8xf32>
    %21 = vector.multi_reduction <add>, %20, %cst_10 [1] : vector<8x32xf32> to vector<8xf32>
    %22 = vector.shape_cast %21 : vector<8xf32> to vector<8x1xf32>
    %cst_11 = arith.constant 3.200000e+01 : f32
    %23 = vector.broadcast %cst_11 : f32 to vector<8x1xf32>
    %24 = arith.divf %22, %23 : vector<8x1xf32>
    %25 = vector.broadcast %17 : vector<8x1xf32> to vector<8x32xf32>
    %26 = arith.subf %11, %25 : vector<8x32xf32>
    %cst_12 = arith.constant 9.99999974E-6 : f32
    %27 = vector.broadcast %cst_12 : f32 to vector<8x1xf32>
    %28 = arith.addf %24, %27 : vector<8x1xf32>
    %29 = math.rsqrt %28 : vector<8x1xf32>
    %30 = vector.broadcast %29 : vector<8x1xf32> to vector<8x32xf32>
    %31 = arith.mulf %26, %30 : vector<8x32xf32>
    %32 = vector.broadcast %12 : vector<1x32xf32> to vector<8x32xf32>
    %33 = arith.mulf %31, %32 : vector<8x32xf32>
    %34 = vector.broadcast %13 : vector<1x32xf32> to vector<8x32xf32>
    %35 = arith.addf %33, %34 : vector<8x32xf32>
    %36 = arith.truncf %35 : vector<8x32xf32> to vector<8x32xbf16>
    %c0_13 = arith.constant 0 : index
    %c0_14 = arith.constant 0 : index
    %37 = vector.load %arg4[%c0_13, %c0_14] : memref<32x96xf32, #tpu.memory_space<vmem>>, vector<32x96xf32>
    %38 = arith.truncf %37 : vector<32x96xf32> to vector<32x96xbf16>
    %cst_15 = arith.constant dense<0.000000e+00> : vector<8x96xf32>
    %39 = tpu.matmul %36, %38, %cst_15 {dimension_numbers = #tpu.dot_dimension_numbers<[1], [0], [0], [1], [0, 0, 1, 1], [], []>} : vector<8x32xbf16>, vector<32x96xbf16>, vector<8x96xf32> -> vector<8x96xf32>
    %c0_16 = arith.constant 0 : index
    %c0_17 = arith.constant 0 : index
    %40 = vector.load %arg6[%c0_16, %c0_17] : memref<8x8xf32, #tpu.memory_space<vmem>>, vector<8x8xf32>
    %c0_18 = arith.constant 0 : index
    %c0_19 = arith.constant 0 : index
    %41 = vector.load %arg7[%c0_18, %c0_19] : memref<8x8xf32, #tpu.memory_space<vmem>>, vector<8x8xf32>
    %42 = tpu.iota {dimensions = array<i32: 0>} : vector<8x8xi32>
    %43 = tpu.iota {dimensions = array<i32: 1>} : vector<8x8xi32>
    %44 = arith.cmpi sge, %42, %43 : vector<8x8xi32>
    %c0_20 = arith.constant 0 : index
    %c0_21 = arith.constant 0 : index
    %45 = vector.load %arg5[%c0_20, %c0_21] : memref<32x32xf32, #tpu.memory_space<vmem>>, vector<32x32xf32>
    %46 = arith.truncf %45 : vector<32x32xf32> to vector<32x32xbf16>
    %cst_22 = arith.constant 0.000000e+00 : f32
    %47 = vector.broadcast %cst_22 : f32 to vector<8x32xf32>
    %48 = vector.extract_strided_slice %39 {offsets = [0, 0], sizes = [8, 16], strides = [1, 1]} : vector<8x96xf32> to vector<8x16xf32>
    %49 = vector.extract_strided_slice %39 {offsets = [0, 32], sizes = [8, 16], strides = [1, 1]} : vector<8x96xf32> to vector<8x16xf32>
    %50 = vector.extract_strided_slice %39 {offsets = [0, 64], sizes = [8, 16], strides = [1, 1]} : vector<8x96xf32> to vector<8x16xf32>
    %51 = arith.mulf %48, %48 : vector<8x16xf32>
    %cst_23 = arith.constant dense<0.000000e+00> : vector<8xf32>
    %52 = vector.multi_reduction <add>, %51, %cst_23 [1] : vector<8x16xf32> to vector<8xf32>
    %53 = vector.shape_cast %52 : vector<8xf32> to vector<8x1xf32>
    %cst_24 = arith.constant 1.600000e+01 : f32
    %54 = vector.broadcast %cst_24 : f32 to vector<8x1xf32>
    %55 = arith.divf %53, %54 : vector<8x1xf32>
    %cst_25 = arith.constant 1.1920929E-7 : f32
    %56 = vector.broadcast %cst_25 : f32 to vector<8x1xf32>
    %57 = arith.addf %55, %56 : vector<8x1xf32>
    %58 = math.rsqrt %57 : vector<8x1xf32>
    %59 = vector.broadcast %58 : vector<8x1xf32> to vector<8x16xf32>
    %60 = arith.mulf %48, %59 : vector<8x16xf32>
    %cst_26 = arith.constant 1.200000e-01 : f32
    %61 = vector.broadcast %cst_26 : f32 to vector<8x16xf32>
    %62 = arith.mulf %60, %61 : vector<8x16xf32>
    %63 = arith.mulf %49, %49 : vector<8x16xf32>
    %cst_27 = arith.constant dense<0.000000e+00> : vector<8xf32>
    %64 = vector.multi_reduction <add>, %63, %cst_27 [1] : vector<8x16xf32> to vector<8xf32>
    %65 = vector.shape_cast %64 : vector<8xf32> to vector<8x1xf32>
    %cst_28 = arith.constant 1.600000e+01 : f32
    %66 = vector.broadcast %cst_28 : f32 to vector<8x1xf32>
    %67 = arith.divf %65, %66 : vector<8x1xf32>
    %cst_29 = arith.constant 1.1920929E-7 : f32
    %68 = vector.broadcast %cst_29 : f32 to vector<8x1xf32>
    %69 = arith.addf %67, %68 : vector<8x1xf32>
    %70 = math.rsqrt %69 : vector<8x1xf32>
    %71 = vector.broadcast %70 : vector<8x1xf32> to vector<8x16xf32>
    %72 = arith.mulf %49, %71 : vector<8x16xf32>
    %73 = vector.extract_strided_slice %62 {offsets = [0, 0], sizes = [8, 8], strides = [1, 1]} : vector<8x16xf32> to vector<8x8xf32>
    %74 = vector.extract_strided_slice %62 {offsets = [0, 8], sizes = [8, 8], strides = [1, 1]} : vector<8x16xf32> to vector<8x8xf32>
    %75 = vector.extract_strided_slice %72 {offsets = [0, 0], sizes = [8, 8], strides = [1, 1]} : vector<8x16xf32> to vector<8x8xf32>
    %76 = vector.extract_strided_slice %72 {offsets = [0, 8], sizes = [8, 8], strides = [1, 1]} : vector<8x16xf32> to vector<8x8xf32>
    %77 = arith.mulf %73, %40 : vector<8x8xf32>
    %78 = arith.mulf %74, %41 : vector<8x8xf32>
    %79 = arith.addf %77, %78 : vector<8x8xf32>
    %80 = arith.mulf %74, %40 : vector<8x8xf32>
    %81 = arith.mulf %73, %41 : vector<8x8xf32>
    %82 = arith.subf %80, %81 : vector<8x8xf32>
    %83 = arith.mulf %75, %40 : vector<8x8xf32>
    %84 = arith.mulf %76, %41 : vector<8x8xf32>
    %85 = arith.addf %83, %84 : vector<8x8xf32>
    %86 = arith.mulf %76, %40 : vector<8x8xf32>
    %87 = arith.mulf %75, %41 : vector<8x8xf32>
    %88 = arith.subf %86, %87 : vector<8x8xf32>
    %cst_30 = arith.constant dense<0.000000e+00> : vector<8x8xf32>
    %89 = tpu.matmul %79, %85, %cst_30 {dimension_numbers = #tpu.dot_dimension_numbers<[1], [1], [0], [0], [0, 0, 1, 0], [], []>} : vector<8x8xf32>, vector<8x8xf32>, vector<8x8xf32> -> vector<8x8xf32>
    %cst_31 = arith.constant dense<0.000000e+00> : vector<8x8xf32>
    %90 = tpu.matmul %82, %88, %cst_31 {dimension_numbers = #tpu.dot_dimension_numbers<[1], [1], [0], [0], [0, 0, 1, 0], [], []>} : vector<8x8xf32>, vector<8x8xf32>, vector<8x8xf32> -> vector<8x8xf32>
    %91 = arith.addf %89, %90 : vector<8x8xf32>
    %cst_32 = arith.constant -1.000000e+30 : f32
    %92 = vector.broadcast %cst_32 : f32 to vector<8x8xf32>
    %93 = arith.select %44, %91, %92 : vector<8x8xi1>, vector<8x8xf32>
    %cst_33 = arith.constant dense<0xFF800000> : vector<8xf32>
    %94 = vector.multi_reduction <maximumf>, %93, %cst_33 [1] : vector<8x8xf32> to vector<8xf32>
    %95 = vector.shape_cast %94 : vector<8xf32> to vector<8x1xf32>
    %96 = vector.broadcast %95 : vector<8x1xf32> to vector<8x8xf32>
    %97 = arith.subf %93, %96 : vector<8x8xf32>
    %98 = math.exp %97 : vector<8x8xf32>
    %cst_34 = arith.constant dense<0.000000e+00> : vector<8xf32>
    %99 = vector.multi_reduction <add>, %98, %cst_34 [1] : vector<8x8xf32> to vector<8xf32>
    %100 = vector.shape_cast %99 : vector<8xf32> to vector<8x1xf32>
    %cst_35 = arith.constant dense<0.000000e+00> : vector<8x16xf32>
    %101 = tpu.matmul %98, %50, %cst_35 {dimension_numbers = #tpu.dot_dimension_numbers<[1], [0], [0], [1], [0, 0, 1, 1], [], []>} : vector<8x8xf32>, vector<8x16xf32>, vector<8x16xf32> -> vector<8x16xf32>
    %102 = tpu.reciprocal %100 {approx = true} : vector<8x1xf32> -> vector<8x1xf32>
    %103 = vector.broadcast %102 : vector<8x1xf32> to vector<8x16xf32>
    %104 = arith.mulf %101, %103 : vector<8x16xf32>
    %105 = arith.truncf %104 : vector<8x16xf32> to vector<8x16xbf16>
    %106 = vector.extract_strided_slice %46 {offsets = [0, 0], sizes = [16, 32], strides = [1, 1]} : vector<32x32xbf16> to vector<16x32xbf16>
    %cst_36 = arith.constant dense<0.000000e+00> : vector<8x32xf32>
    %107 = tpu.matmul %105, %106, %cst_36 {dimension_numbers = #tpu.dot_dimension_numbers<[1], [0], [0], [1], [0, 0, 1, 1], [], []>} : vector<8x16xbf16>, vector<16x32xbf16>, vector<8x32xf32> -> vector<8x32xf32>
    %108 = arith.addf %47, %107 : vector<8x32xf32>
    %109 = vector.extract_strided_slice %39 {offsets = [0, 16], sizes = [8, 16], strides = [1, 1]} : vector<8x96xf32> to vector<8x16xf32>
    %110 = vector.extract_strided_slice %39 {offsets = [0, 48], sizes = [8, 16], strides = [1, 1]} : vector<8x96xf32> to vector<8x16xf32>
    %111 = vector.extract_strided_slice %39 {offsets = [0, 80], sizes = [8, 16], strides = [1, 1]} : vector<8x96xf32> to vector<8x16xf32>
    %112 = arith.mulf %109, %109 : vector<8x16xf32>
    %cst_37 = arith.constant dense<0.000000e+00> : vector<8xf32>
    %113 = vector.multi_reduction <add>, %112, %cst_37 [1] : vector<8x16xf32> to vector<8xf32>
    %114 = vector.shape_cast %113 : vector<8xf32> to vector<8x1xf32>
    %cst_38 = arith.constant 1.600000e+01 : f32
    %115 = vector.broadcast %cst_38 : f32 to vector<8x1xf32>
    %116 = arith.divf %114, %115 : vector<8x1xf32>
    %cst_39 = arith.constant 1.1920929E-7 : f32
    %117 = vector.broadcast %cst_39 : f32 to vector<8x1xf32>
    %118 = arith.addf %116, %117 : vector<8x1xf32>
    %119 = math.rsqrt %118 : vector<8x1xf32>
    %120 = vector.broadcast %119 : vector<8x1xf32> to vector<8x16xf32>
    %121 = arith.mulf %109, %120 : vector<8x16xf32>
    %cst_40 = arith.constant 1.200000e-01 : f32
    %122 = vector.broadcast %cst_40 : f32 to vector<8x16xf32>
    %123 = arith.mulf %121, %122 : vector<8x16xf32>
    %124 = arith.mulf %110, %110 : vector<8x16xf32>
    %cst_41 = arith.constant dense<0.000000e+00> : vector<8xf32>
    %125 = vector.multi_reduction <add>, %124, %cst_41 [1] : vector<8x16xf32> to vector<8xf32>
    %126 = vector.shape_cast %125 : vector<8xf32> to vector<8x1xf32>
    %cst_42 = arith.constant 1.600000e+01 : f32
    %127 = vector.broadcast %cst_42 : f32 to vector<8x1xf32>
    %128 = arith.divf %126, %127 : vector<8x1xf32>
    %cst_43 = arith.constant 1.1920929E-7 : f32
    %129 = vector.broadcast %cst_43 : f32 to vector<8x1xf32>
    %130 = arith.addf %128, %129 : vector<8x1xf32>
    %131 = math.rsqrt %130 : vector<8x1xf32>
    %132 = vector.broadcast %131 : vector<8x1xf32> to vector<8x16xf32>
    %133 = arith.mulf %110, %132 : vector<8x16xf32>
    %134 = vector.extract_strided_slice %123 {offsets = [0, 0], sizes = [8, 8], strides = [1, 1]} : vector<8x16xf32> to vector<8x8xf32>
    %135 = vector.extract_strided_slice %123 {offsets = [0, 8], sizes = [8, 8], strides = [1, 1]} : vector<8x16xf32> to vector<8x8xf32>
    %136 = vector.extract_strided_slice %133 {offsets = [0, 0], sizes = [8, 8], strides = [1, 1]} : vector<8x16xf32> to vector<8x8xf32>
    %137 = vector.extract_strided_slice %133 {offsets = [0, 8], sizes = [8, 8], strides = [1, 1]} : vector<8x16xf32> to vector<8x8xf32>
    %138 = arith.mulf %134, %40 : vector<8x8xf32>
    %139 = arith.mulf %135, %41 : vector<8x8xf32>
    %140 = arith.addf %138, %139 : vector<8x8xf32>
    %141 = arith.mulf %135, %40 : vector<8x8xf32>
    %142 = arith.mulf %134, %41 : vector<8x8xf32>
    %143 = arith.subf %141, %142 : vector<8x8xf32>
    %144 = arith.mulf %136, %40 : vector<8x8xf32>
    %145 = arith.mulf %137, %41 : vector<8x8xf32>
    %146 = arith.addf %144, %145 : vector<8x8xf32>
    %147 = arith.mulf %137, %40 : vector<8x8xf32>
    %148 = arith.mulf %136, %41 : vector<8x8xf32>
    %149 = arith.subf %147, %148 : vector<8x8xf32>
    %cst_44 = arith.constant dense<0.000000e+00> : vector<8x8xf32>
    %150 = tpu.matmul %140, %146, %cst_44 {dimension_numbers = #tpu.dot_dimension_numbers<[1], [1], [0], [0], [0, 0, 1, 0], [], []>} : vector<8x8xf32>, vector<8x8xf32>, vector<8x8xf32> -> vector<8x8xf32>
    %cst_45 = arith.constant dense<0.000000e+00> : vector<8x8xf32>
    %151 = tpu.matmul %143, %149, %cst_45 {dimension_numbers = #tpu.dot_dimension_numbers<[1], [1], [0], [0], [0, 0, 1, 0], [], []>} : vector<8x8xf32>, vector<8x8xf32>, vector<8x8xf32> -> vector<8x8xf32>
    %152 = arith.addf %150, %151 : vector<8x8xf32>
    %cst_46 = arith.constant -1.000000e+30 : f32
    %153 = vector.broadcast %cst_46 : f32 to vector<8x8xf32>
    %154 = arith.select %44, %152, %153 : vector<8x8xi1>, vector<8x8xf32>
    %cst_47 = arith.constant dense<0xFF800000> : vector<8xf32>
    %155 = vector.multi_reduction <maximumf>, %154, %cst_47 [1] : vector<8x8xf32> to vector<8xf32>
    %156 = vector.shape_cast %155 : vector<8xf32> to vector<8x1xf32>
    %157 = vector.broadcast %156 : vector<8x1xf32> to vector<8x8xf32>
    %158 = arith.subf %154, %157 : vector<8x8xf32>
    %159 = math.exp %158 : vector<8x8xf32>
    %cst_48 = arith.constant dense<0.000000e+00> : vector<8xf32>
    %160 = vector.multi_reduction <add>, %159, %cst_48 [1] : vector<8x8xf32> to vector<8xf32>
    %161 = vector.shape_cast %160 : vector<8xf32> to vector<8x1xf32>
    %cst_49 = arith.constant dense<0.000000e+00> : vector<8x16xf32>
    %162 = tpu.matmul %159, %111, %cst_49 {dimension_numbers = #tpu.dot_dimension_numbers<[1], [0], [0], [1], [0, 0, 1, 1], [], []>} : vector<8x8xf32>, vector<8x16xf32>, vector<8x16xf32> -> vector<8x16xf32>
    %163 = tpu.reciprocal %161 {approx = true} : vector<8x1xf32> -> vector<8x1xf32>
    %164 = vector.broadcast %163 : vector<8x1xf32> to vector<8x16xf32>
    %165 = arith.mulf %162, %164 : vector<8x16xf32>
    %166 = arith.truncf %165 : vector<8x16xf32> to vector<8x16xbf16>
    %167 = vector.extract_strided_slice %46 {offsets = [16, 0], sizes = [16, 32], strides = [1, 1]} : vector<32x32xbf16> to vector<16x32xbf16>
    %cst_50 = arith.constant dense<0.000000e+00> : vector<8x32xf32>
    %168 = tpu.matmul %166, %167, %cst_50 {dimension_numbers = #tpu.dot_dimension_numbers<[1], [0], [0], [1], [0, 0, 1, 1], [], []>} : vector<8x16xbf16>, vector<16x32xbf16>, vector<8x32xf32> -> vector<8x32xf32>
    %169 = arith.addf %108, %168 : vector<8x32xf32>
    %170 = arith.addf %11, %169 : vector<8x32xf32>
    %c0_51 = arith.constant 0 : index
    %c0_52 = arith.constant 0 : index
    %c0_53 = arith.constant 0 : index
    %171 = vector.load %arg8[%c0_51, %c0_52, %c0_53] : memref<1x8x32xf32, #tpu.memory_space<vmem>>, vector<1x8x32xf32>
    %172 = vector.shape_cast %171 : vector<1x8x32xf32> to vector<8x32xf32>
    %173 = vector.shape_cast %170 : vector<8x32xf32> to vector<1x8x32xf32>
    tpu.vector_store %arg8[%c0_51, %c0_52, %c0_53], %173 {strides = array<i32>} : memref<1x8x32xf32, #tpu.memory_space<vmem>>, vector<1x8x32xf32>,
    return
  }
  func.func @transform_0(%arg0: i32) -> (i32, i32, i32) {
    %c0_i32 = arith.constant 0 : i32
    %c0_i32_0 = arith.constant 0 : i32
    %c0_i32_1 = arith.constant 0 : i32
    return %arg0, %c0_i32, %c0_i32_0 : i32, i32, i32
  }
  func.func @transform_1(%arg0: i32) -> (i32, i32) {
    %c0_i32 = arith.constant 0 : i32
    %c0_i32_0 = arith.constant 0 : i32
    %c0_i32_1 = arith.constant 0 : i32
    return %c0_i32, %c0_i32_0 : i32, i32
  }
  func.func @transform_2(%arg0: i32) -> (i32, i32) {
    %c0_i32 = arith.constant 0 : i32
    %c0_i32_0 = arith.constant 0 : i32
    %c0_i32_1 = arith.constant 0 : i32
    return %c0_i32, %c0_i32_0 : i32, i32
  }
  func.func @transform_3(%arg0: i32) -> (i32, i32) {
    %c0_i32 = arith.constant 0 : i32
    %c0_i32_0 = arith.constant 0 : i32
    %c0_i32_1 = arith.constant 0 : i32
    return %c0_i32, %c0_i32_0 : i32, i32
  }
  func.func @transform_4(%arg0: i32) -> (i32, i32) {
    %c0_i32 = arith.constant 0 : i32
    %c0_i32_0 = arith.constant 0 : i32
    %c0_i32_1 = arith.constant 0 : i32
    return %c0_i32, %c0_i32_0 : i32, i32
  }
  func.func @transform_5(%arg0: i32) -> (i32, i32) {
    %c0_i32 = arith.constant 0 : i32
    %c0_i32_0 = arith.constant 0 : i32
    %c0_i32_1 = arith.constant 0 : i32
    return %c0_i32, %c0_i32_0 : i32, i32
  }
  func.func @transform_6(%arg0: i32) -> (i32, i32) {
    %c0_i32 = arith.constant 0 : i32
    %c0_i32_0 = arith.constant 0 : i32
    %c0_i32_1 = arith.constant 0 : i32
    return %c0_i32, %c0_i32_0 : i32, i32
  }
  func.func @transform_7(%arg0: i32) -> (i32, i32, i32) {
    %c0_i32 = arith.constant 0 : i32
    %c0_i32_0 = arith.constant 0 : i32
    %c0_i32_1 = arith.constant 0 : i32
    return %arg0, %c0_i32, %c0_i32_0 : i32, i32, i32
  }
}

module attributes {stable_mosaic.version = 11 : i64} {
  func.func @_mlp_block_kernel(%arg0: i32, %arg1: memref<16x32xf32, #tpu.memory_space<vmem>>, %arg2: memref<1x32xf32, #tpu.memory_space<vmem>>, %arg3: memref<1x32xf32, #tpu.memory_space<vmem>>, %arg4: memref<32x128xf32, #tpu.memory_space<vmem>>, %arg5: memref<128x32xf32, #tpu.memory_space<vmem>>, %arg6: memref<16x32xf32, #tpu.memory_space<vmem>>) attributes {dimension_semantics = [#tpu.dimension_semantics<parallel>], iteration_bounds = array<i64: 1>, scalar_prefetch = 0 : i64, scratch_operands = 0 : i64, tpu.core_type = #tpu.core_type<tc>, window_params = [{transform_indices = @transform_0, window_bounds = array<i64: 16, 32>}, {pipeline_mode = #tpu.pipeline_mode<synchronous>, transform_indices = @transform_1, window_bounds = array<i64: 1, 32>}, {pipeline_mode = #tpu.pipeline_mode<synchronous>, transform_indices = @transform_2, window_bounds = array<i64: 1, 32>}, {pipeline_mode = #tpu.pipeline_mode<synchronous>, transform_indices = @transform_3, window_bounds = array<i64: 32, 128>}, {pipeline_mode = #tpu.pipeline_mode<synchronous>, transform_indices = @transform_4, window_bounds = array<i64: 128, 32>}, {transform_indices = @transform_5, window_bounds = array<i64: 16, 32>}]} {
    %c0 = arith.constant 0 : index
    %c0_0 = arith.constant 0 : index
    %0 = vector.load %arg1[%c0, %c0_0] : memref<16x32xf32, #tpu.memory_space<vmem>>, vector<16x32xf32>
    %c0_1 = arith.constant 0 : index
    %c0_2 = arith.constant 0 : index
    %1 = vector.load %arg2[%c0_1, %c0_2] : memref<1x32xf32, #tpu.memory_space<vmem>>, vector<1x32xf32>
    %c0_3 = arith.constant 0 : index
    %c0_4 = arith.constant 0 : index
    %2 = vector.load %arg3[%c0_3, %c0_4] : memref<1x32xf32, #tpu.memory_space<vmem>>, vector<1x32xf32>
    %cst = arith.constant dense<0.000000e+00> : vector<16xf32>
    %3 = vector.multi_reduction <add>, %0, %cst [1] : vector<16x32xf32> to vector<16xf32>
    %4 = vector.shape_cast %3 : vector<16xf32> to vector<16x1xf32>
    %cst_5 = arith.constant 3.200000e+01 : f32
    %5 = vector.broadcast %cst_5 : f32 to vector<16x1xf32>
    %6 = arith.divf %4, %5 : vector<16x1xf32>
    %7 = vector.broadcast %6 : vector<16x1xf32> to vector<16x32xf32>
    %8 = arith.subf %0, %7 : vector<16x32xf32>
    %9 = arith.mulf %8, %8 : vector<16x32xf32>
    %cst_6 = arith.constant dense<0.000000e+00> : vector<16xf32>
    %10 = vector.multi_reduction <add>, %9, %cst_6 [1] : vector<16x32xf32> to vector<16xf32>
    %11 = vector.shape_cast %10 : vector<16xf32> to vector<16x1xf32>
    %cst_7 = arith.constant 3.200000e+01 : f32
    %12 = vector.broadcast %cst_7 : f32 to vector<16x1xf32>
    %13 = arith.divf %11, %12 : vector<16x1xf32>
    %14 = vector.broadcast %6 : vector<16x1xf32> to vector<16x32xf32>
    %15 = arith.subf %0, %14 : vector<16x32xf32>
    %cst_8 = arith.constant 9.99999974E-6 : f32
    %16 = vector.broadcast %cst_8 : f32 to vector<16x1xf32>
    %17 = arith.addf %13, %16 : vector<16x1xf32>
    %18 = math.rsqrt %17 : vector<16x1xf32>
    %19 = vector.broadcast %18 : vector<16x1xf32> to vector<16x32xf32>
    %20 = arith.mulf %15, %19 : vector<16x32xf32>
    %21 = vector.broadcast %1 : vector<1x32xf32> to vector<16x32xf32>
    %22 = arith.mulf %20, %21 : vector<16x32xf32>
    %23 = vector.broadcast %2 : vector<1x32xf32> to vector<16x32xf32>
    %24 = arith.addf %22, %23 : vector<16x32xf32>
    %25 = arith.truncf %24 : vector<16x32xf32> to vector<16x32xbf16>
    %c0_9 = arith.constant 0 : index
    %c0_10 = arith.constant 0 : index
    %26 = vector.load %arg4[%c0_9, %c0_10] : memref<32x128xf32, #tpu.memory_space<vmem>>, vector<32x128xf32>
    %27 = arith.truncf %26 : vector<32x128xf32> to vector<32x128xbf16>
    %cst_11 = arith.constant dense<0.000000e+00> : vector<16x128xf32>
    %28 = tpu.matmul %25, %27, %cst_11 {dimension_numbers = #tpu.dot_dimension_numbers<[1], [0], [0], [1], [0, 0, 1, 1], [], []>} : vector<16x32xbf16>, vector<32x128xbf16>, vector<16x128xf32> -> vector<16x128xf32>
    %cst_12 = arith.constant 0.000000e+00 : f32
    %29 = vector.broadcast %cst_12 : f32 to vector<16x128xf32>
    %30 = arith.maximumf %28, %29 : vector<16x128xf32>
    %31 = arith.mulf %30, %30 : vector<16x128xf32>
    %32 = arith.truncf %31 : vector<16x128xf32> to vector<16x128xbf16>
    %c0_13 = arith.constant 0 : index
    %c0_14 = arith.constant 0 : index
    %33 = vector.load %arg5[%c0_13, %c0_14] : memref<128x32xf32, #tpu.memory_space<vmem>>, vector<128x32xf32>
    %34 = arith.truncf %33 : vector<128x32xf32> to vector<128x32xbf16>
    %cst_15 = arith.constant dense<0.000000e+00> : vector<16x32xf32>
    %35 = tpu.matmul %32, %34, %cst_15 {dimension_numbers = #tpu.dot_dimension_numbers<[1], [0], [0], [1], [0, 0, 1, 1], [], []>} : vector<16x128xbf16>, vector<128x32xbf16>, vector<16x32xf32> -> vector<16x32xf32>
    %36 = arith.addf %0, %35 : vector<16x32xf32>
    %c0_16 = arith.constant 0 : index
    %c0_17 = arith.constant 0 : index
    %37 = vector.load %arg6[%c0_16, %c0_17] : memref<16x32xf32, #tpu.memory_space<vmem>>, vector<16x32xf32>
    tpu.vector_store %arg6[%c0_16, %c0_17], %36 {strides = array<i32>} : memref<16x32xf32, #tpu.memory_space<vmem>>, vector<16x32xf32>,
    return
  }
  func.func @transform_0(%arg0: i32) -> (i32, i32) {
    %c0_i32 = arith.constant 0 : i32
    %c0_i32_0 = arith.constant 0 : i32
    return %arg0, %c0_i32 : i32, i32
  }
  func.func @transform_1(%arg0: i32) -> (i32, i32) {
    %c0_i32 = arith.constant 0 : i32
    %c0_i32_0 = arith.constant 0 : i32
    %c0_i32_1 = arith.constant 0 : i32
    return %c0_i32, %c0_i32_0 : i32, i32
  }
  func.func @transform_2(%arg0: i32) -> (i32, i32) {
    %c0_i32 = arith.constant 0 : i32
    %c0_i32_0 = arith.constant 0 : i32
    %c0_i32_1 = arith.constant 0 : i32
    return %c0_i32, %c0_i32_0 : i32, i32
  }
  func.func @transform_3(%arg0: i32) -> (i32, i32) {
    %c0_i32 = arith.constant 0 : i32
    %c0_i32_0 = arith.constant 0 : i32
    %c0_i32_1 = arith.constant 0 : i32
    return %c0_i32, %c0_i32_0 : i32, i32
  }
  func.func @transform_4(%arg0: i32) -> (i32, i32) {
    %c0_i32 = arith.constant 0 : i32
    %c0_i32_0 = arith.constant 0 : i32
    %c0_i32_1 = arith.constant 0 : i32
    return %c0_i32, %c0_i32_0 : i32, i32
  }
  func.func @transform_5(%arg0: i32) -> (i32, i32) {
    %c0_i32 = arith.constant 0 : i32
    %c0_i32_0 = arith.constant 0 : i32
    return %arg0, %c0_i32 : i32, i32
  }
}

</mosaic_0001>

<bundles_post_ra>
// kernel: fwd.6
= control target key start
LH: loop header
LB: loop body
LE: loop exit
PB: predicated region body
PF: predicated region fallthrough
CT: control target
= control target key end

     0   :  { %vm25_vm0 = vcmask 261120   ;;  %v247_v17 = vmov 0.0   ;;  %vm248_vm1 = vmmov 0   ;;  %s396_s0 = inlined_call_operand.vmem [shape: f32[16,32], index: 0, kind: input, shape index: {}]   ;;  %s397_s3 = inlined_call_operand.vmem [shape: f32[32,128], index: 3, kind: input, shape index: {}]   ;;  %s398_s4 = inlined_call_operand.vmem [shape: f32[128,32], index: 4, kind: input, shape index: {}]   ;;  %s399_s1 = inlined_call_operand.vmem [shape: f32[1,32], index: 1, kind: input, shape index: {}]   ;;  %s400_s2 = inlined_call_operand.vmem [shape: f32[1,32], index: 2, kind: input, shape index: {}]   ;;  %s401_s5 = inlined_call_operand.vmem [shape: f32[16,32], index: 5, kind: output, shape index: {}]  }
   0x1   :  { %v282_v0 = vld [vmem:[%s396_s0] sm:$0xff]  ;;  %v287_v1 = vld [vmem:[%s396_s0 + $0x8] sm:$0xff]  ;;  %213 = vmatprep.subr.bf16.mxu0 %v247_v17  ;;  %v72_v18 = vld [vmem:[%s397_s3 + $0x10] sm:$0xff]  ;;  %221 = vmatprep.subr.bf16.mxu1 %v247_v17 }
   0x2   :  { %v26_v2 = vsel %vm25_vm0, %v282_v0, 0.0  ;;  %v29_v3 = vsel %vm25_vm0, %v287_v1, 0.0  ;;  %v70_v14 = vld [vmem:[%s397_s3] sm:$0xff]  ;;  %v71_v15 = vld [vmem:[%s397_s3 + $0x8] sm:$0xff]  ;;  %v73_v19 = vld [vmem:[%s397_s3 + $0x18] sm:$0xff]  ;;  %217 = vmatprep.mubr.msk.bf16.mxu0 %vm248_vm1, %v247_v17  ;;  %237 = vmatprep.mubr.msk.bf16.mxu1 %vm248_vm1, %v247_v17 }
   0x3   :  { %27 = vadd.xlane.f32.xlu0 %v26_v2  ;;  %v74_v16 = vpack.c.bf16 %v71_v15, %v70_v14  ;;  %v75_v20 = vpack.c.bf16 %v73_v19, %v72_v18  ;;  %v125_v21 = vld [vmem:[%s398_s4] sm:$0xff]  ;;  %v126_v22 = vld [vmem:[%s398_s4 + $0x8] sm:$0xff]  ;;  %v127_v23 = vld [vmem:[%s398_s4 + $0x10] sm:$0xff] }
   0x4   :  { %v141_v24 = vpack.c.bf16 %v126_v22, %v125_v21  ;;  %v128_v25 = vld [vmem:[%s398_s4 + $0x18] sm:$0xff]  ;;  %v129_v27 = vld [vmem:[%s398_s4 + $0x20] sm:$0xff]  ;;  %v130_v28 = vld [vmem:[%s398_s4 + $0x28] sm:$0xff] }
   0x5   :  { %214 = vmatpush3.bf16.msra.mxu0 %v74_v16  ;;  %v142_v26 = vpack.c.bf16 %v128_v25, %v127_v23  ;;  %v143_v29 = vpack.c.bf16 %v130_v28, %v129_v27  ;;  %v131_v30 = vld [vmem:[%s398_s4 + $0x30] sm:$0xff]  ;;  %v132_v31 = vld [vmem:[%s398_s4 + $0x38] sm:$0xff]  ;;  %v133_v33 = vld [vmem:[%s398_s4 + $0x40] sm:$0xff] }
   0x6   :  { %215 = vmatprep.subr.bf16.mxu0 %v247_v17  ;;  %222 = vmatpush3.bf16.msra.mxu1 %v141_v24  ;;  %v144_v32 = vpack.c.bf16 %v132_v31, %v131_v30  ;;  %v134_v34 = vld [vmem:[%s398_s4 + $0x48] sm:$0xff]  ;;  %v135_v36 = vld [vmem:[%s398_s4 + $0x50] sm:$0xff]  ;;  %v136_v37 = vld [vmem:[%s398_s4 + $0x58] sm:$0xff] }
   0x7   :  { %30 = vadd.xlane.f32.xlu0 %v29_v3  ;;  %223 = vmatprep.subr.bf16.mxu1 %v247_v17  ;;  %v145_v35 = vpack.c.bf16 %v134_v34, %v133_v33  ;;  %v146_v38 = vpack.c.bf16 %v136_v37, %v135_v36  ;;  %v198_v47 = vld [vmem:[%s399_s1] ss:$0 sm:$0xff]  ;;  %v138_v57 = vld [vmem:[%s398_s4 + $0x68] sm:$0xff]  ;;  %v139_v59 = vld [vmem:[%s398_s4 + $0x70] sm:$0xff] }
   0x8   :  { %v199_v51 = vld [vmem:[%s400_s2] ss:$0 sm:$0xff]  ;;  %v140_v60 = vld [vmem:[%s398_s4 + $0x78] sm:$0xff] }
   0x9   :  { %216 = vmatpush3.bf16.msra.mxu0 %v75_v20  ;;  %v137_v56 = vld [vmem:[%s398_s4 + $0x60] sm:$0xff]  ;;  %v148_v61 = vpack.c.bf16 %v140_v60, %v139_v59 }
   0xa   :  { %224 = vmatpush3.bf16.msra.mxu1 %v142_v26  ;;  %v147_v58 = vpack.c.bf16 %v138_v57, %v137_v56 }
   0xb   :  { %225 = vmatprep.subr.bf16.mxu1 %v247_v17 }
   0xe   :  { %226 = vmatpush3.bf16.msra.mxu1 %v143_v29 }
   0xf   :  { %227 = vmatprep.subr.bf16.mxu1 %v247_v17 }
  0x12   :  { %228 = vmatpush3.bf16.msra.mxu1 %v144_v32 }
  0x13   :  { %229 = vmatprep.subr.bf16.mxu1 %v247_v17 }
  0x16   :  { %230 = vmatpush3.bf16.msra.mxu1 %v145_v35 }
  0x17   :  { %231 = vmatprep.subr.bf16.mxu1 %v247_v17 }
  0x1a   :  { %232 = vmatpush3.bf16.msra.mxu1 %v146_v38 }
  0x1b   :  { %233 = vmatprep.subr.bf16.mxu1 %v247_v17 }
  0x1e   :  { %234 = vmatpush3.bf16.msra.mxu1 %v147_v58 }
  0x1f   :  { %235 = vmatprep.subr.bf16.mxu1 %v247_v17 }
  0x22   :  { %236 = vmatpush3.bf16.msra.mxu1 %v148_v61 }
  0x90   :  { %v28_v4 = vpop.xlane.xlu0 %27 }
  0x91   :  { %v33_v5 = vmul.f32 0.03125, %v28_v4 }
  0x93   :  { %v294_v6 = vsub.f32 %v282_v0, %v33_v5 }
  0x94   :  { %v31_v7 = vpop.xlane.xlu0 %30 }
  0x95   :  { %v34_v8 = vmul.f32 0.03125, %v31_v7  ;;  %v37_v9 = vmul.f32 %v294_v6, %v294_v6 }
  0x97   :  { %v299_v10 = vsub.f32 %v287_v1, %v34_v8  ;;  %v39_v11 = vsel %vm25_vm0, %v37_v9, 0.0 }
  0x98   :  { %40 = vadd.xlane.f32.xlu1 %v39_v11 }
  0x99   :  { %v38_v12 = vmul.f32 %v299_v10, %v299_v10 }
  0x9b   :  { %v42_v13 = vsel %vm25_vm0, %v38_v12, 0.0 }
  0x9c   :  { %43 = vadd.xlane.f32.xlu1 %v42_v13 }
 0x125   :  { %v41_v39 = vpop.xlane.xlu1 %40 }
 0x126   :  { %v45_v40 = vmul.f32 0.03125, %v41_v39 }
 0x128   :  { %v47_v41 = vadd.f32 1e-05, %v45_v40 }
 0x129   :  { %v44_v42 = vpop.xlane.xlu1 %43 }
 0x12a   :  { %243 = vrsqrt.f32 %v47_v41  ;;  %v46_v43 = vmul.f32 0.03125, %v44_v42 }
 0x12c   :  { %v48_v44 = vadd.f32 1e-05, %v46_v43 }
 0x12e   :  { %245 = vrsqrt.f32 %v48_v44 }
 0x134   :  { %v244_v45 = vpop.eup %243 }
 0x135   :  { %v51_v46 = vmul.f32 %v244_v45, %v294_v6 }
 0x137   :  { %v59_v50 = vmul.f32 %v198_v47, %v51_v46 }
 0x138   :  { %v246_v48 = vpop.eup %245 }
 0x139   :  { %v52_v49 = vmul.f32 %v246_v48, %v299_v10  ;;  %v67_v53 = vadd.f32 %v199_v51, %v59_v50 }
 0x13b   :  { %v60_v52 = vmul.f32 %v198_v47, %v52_v49 }
 0x13d   :  { %v68_v54 = vadd.f32 %v199_v51, %v60_v52 }
 0x13f   :  { %v69_v55 = vpack.c.bf16 %v68_v54, %v67_v53 }
 0x141   :  { %218 = vmatmul.mubr.msk.bf16.vlgmr.msra.gmra.mrb[0].mxu0 %vm25_vm0, %v69_v55 }
 0x214   :  { %v113_v62 = vpop.f32.mrb[0].mxu0 }
 0x215   :  { %v120_v63 = vmax.f32 %v113_v62, 0.0  ;;  %v219_v2 = vpop.f32.mrb[1].mxu0 }
 0x216   :  { %v116_v3 = vpop.f32.mrb[2].mxu0 }
 0x217   :  { %v121_v4 = vmax.f32 %v116_v3, 0.0  ;;  %v220_v5 = vpop.f32.mrb[3].mxu0  ;;  %v122_v6 = vmul.f32 %v120_v63, %v120_v63 }
 0x219   :  { %v123_v7 = vmul.f32 %v121_v4, %v121_v4 }
 0x21b   :  { %v124_v8 = vpack.c.bf16 %v123_v7, %v122_v6 }
 0x21d   :  { %238 = vmatmul.mubr.bf16.vlgmr.msra.gmra.mrb[0].mxu1 %v124_v8 }
 0x2f0   :  { %v183_v9 = vpop.f32.mrb[0].mxu1 }
 0x2f1   :  { %v190_v10 = vadd.f32 %v183_v9, %v282_v0  ;;  %v239_v11 = vpop.f32.mrb[1].mxu1 }
 0x2f2   :  { %v186_v12 = vpop.f32.mrb[2].mxu1 }
 0x2f3   :  { %192 = vst.msk [vmem:[%s401_s5] sm:$0xff] %vm25_vm0, %v190_v10  ;;  %v191_v13 = vadd.f32 %v186_v12, %v287_v1  ;;  %v240_v14 = vpop.f32.mrb[3].mxu1 }
 0x2f5   :  { %193 = vst.msk [vmem:[%s401_s5 + $0x8] sm:$0xff] %vm25_vm0, %v191_v13 }

// kernel: fwd.9
= control target key start
LH: loop header
LB: loop body
LE: loop exit
PB: predicated region body
PF: predicated region fallthrough
CT: control target
= control target key end

     0   :  { %vm23_vm0 = vcmask 261120   ;;  %s302_s0 = inlined_call_operand.vmem [shape: f32[16,32], index: 0, kind: input, shape index: {}]   ;;  %s303_s1 = inlined_call_operand.vmem [shape: f32[1,32], index: 1, kind: input, shape index: {}]   ;;  %s304_s2 = inlined_call_operand.vmem [shape: f32[1,32], index: 2, kind: input, shape index: {}]   ;;  %s305_s3 = inlined_call_operand.vmem [shape: f32[32,128], index: 3, kind: input, shape index: {}]   ;;  %s306_s4 = inlined_call_operand.hbm [shape: f32[16,128], index: 4, kind: output, shape index: {}]  }
   0x1   :  { %v19_v0 = vld [vmem:[%s302_s0] sm:$0xff]  ;;  %v20_v1 = vld [vmem:[%s302_s0 + $0x8] sm:$0xff] }
   0x2   :  { %9 = vsyncpa [#allocation3], 0  ;;  %v21_v2 = vmul.f32 %v19_v0, %v19_v0  ;;  %v22_v3 = vmul.f32 %v20_v1, %v20_v1  ;;  %v84_v28 = vld [vmem:[%s305_s3] sm:$0xff]  ;;  %v85_v29 = vld [vmem:[%s305_s3 + $0x8] sm:$0xff]  ;;  %v229_v31 = vmov 0.0   ;;  %vm230_vm1 = vmmov 0  }
   0x3   :  { %v88_v30 = vpack.c.bf16 %v85_v29, %v84_v28  ;;  %176 = vmatprep.subr.bf16.mxu0 %v229_v31  ;;  %v86_v32 = vld [vmem:[%s305_s3 + $0x10] sm:$0xff]  ;;  %v87_v33 = vld [vmem:[%s305_s3 + $0x18] sm:$0xff]  ;;  %180 = vmatprep.mubr.msk.bf16.mxu0 %vm230_vm1, %v229_v31  ;;  %v168_v43 = vld [vmem:[%s303_s1] ss:$0 sm:$0xff]  ;;  %s231_s1 = smov [#allocation2]  }
   0x4   :  { %v24_v4 = vsel %vm23_vm0, %v21_v2, 0.0  ;;  %v27_v5 = vsel %vm23_vm0, %v22_v3, 0.0  ;;  %v89_v34 = vpack.c.bf16 %v87_v33, %v86_v32  ;;  %v169_v47 = vld [vmem:[%s304_s2] ss:$0 sm:$0xff]  ;;  %s157_s2 = sshll.u32 %s231_s1, 4  ;;  %s158_s2 = int_to_ptr.vmem [resolvable:$true] %s157_s2 }
   0x5   :  { %25 = vadd.xlane.f32.xlu0 %v24_v4  ;;  %177 = vmatpush3.bf16.msra.mxu0 %v88_v30  ;;  %s205_s29 = scalar_lea.vmem %s158_s2, 256  ;;  %p210_p1 = scmp.lt.s32.totalorder %s158_s2, %s158_s2 }
   0x6   :  { %178 = vmatprep.subr.bf16.mxu0 %v229_v31  ;;  %p206_p0 = scmp.ne.s32.totalorder %s158_s2, %s205_s29  ;;  %p211_p2 = scmp.lt.s32.totalorder %s205_s29, %s205_s29 }
   0x8   :  { %p212_p3 = por %p211_p2, %p210_p1 }
   0x9   :  { %28 = vadd.xlane.f32.xlu0 %v27_v5  ;;  %179 = vmatpush3.bf16.msra.mxu0 %v89_v34 }
   0xa   :  { %p213_p4 = pnand %p212_p3, %p206_p0 }
  0x92   :  { %v26_v6 = vpop.xlane.xlu0 %25 }
  0x93   :  { %v31_v7 = vmul.f32 0.03125, %v26_v6 }
  0x95   :  { %v33_v8 = vadd.f32 1.1920929e-07, %v31_v7 }
  0x96   :  { %v29_v9 = vpop.xlane.xlu0 %28 }
  0x97   :  { %189 = vrsqrt.f32 %v33_v8  ;;  %v32_v10 = vmul.f32 0.03125, %v29_v9 }
  0x99   :  { %v34_v11 = vadd.f32 1.1920929e-07, %v32_v10 }
  0x9b   :  { %191 = vrsqrt.f32 %v34_v11 }
  0xa1   :  { %v190_v12 = vpop.eup %189 }
  0xa2   :  { %v37_v13 = vmul.f32 %v190_v12, %v19_v0 }
  0xa4   :  { %v41_v14 = vsel %vm23_vm0, %v37_v13, 0.0 }
  0xa5   :  { %v192_v15 = vpop.eup %191  ;;  %42 = vadd.xlane.f32.xlu1 %v41_v14 }
  0xa6   :  { %v38_v16 = vmul.f32 %v192_v15, %v20_v1 }
  0xa8   :  { %v44_v17 = vsel %vm23_vm0, %v38_v16, 0.0 }
  0xa9   :  { %45 = vadd.xlane.f32.xlu1 %v44_v17 }
 0x132   :  { %v43_v18 = vpop.xlane.xlu1 %42 }
 0x133   :  { %v47_v19 = vmul.f32 0.03125, %v43_v18 }
 0x135   :  { %v49_v20 = vsub.f32 %v37_v13, %v47_v19 }
 0x136   :  { %v46_v21 = vpop.xlane.xlu1 %45 }
 0x137   :  { %v48_v22 = vmul.f32 0.03125, %v46_v21  ;;  %v51_v23 = vmul.f32 %v49_v20, %v49_v20 }
 0x139   :  { %v50_v24 = vsub.f32 %v38_v16, %v48_v22  ;;  %v53_v25 = vsel %vm23_vm0, %v51_v23, 0.0 }
 0x13a   :  { %54 = vadd.xlane.f32.xlu0 %v53_v25 }
 0x13b   :  { %v52_v26 = vmul.f32 %v50_v24, %v50_v24 }
 0x13d   :  { %v56_v27 = vsel %vm23_vm0, %v52_v26, 0.0 }
 0x13e   :  { %57 = vadd.xlane.f32.xlu1 %v56_v27 }
 0x1c7   :  { %v55_v35 = vpop.xlane.xlu0 %54 }
 0x1c8   :  { %v59_v36 = vmul.f32 0.03125, %v55_v35 }
 0x1ca   :  { %v61_v37 = vadd.f32 1e-05, %v59_v36 }
 0x1cb   :  { %v58_v38 = vpop.xlane.xlu1 %57 }
 0x1cc   :  { %193 = vrsqrt.f32 %v61_v37  ;;  %v60_v39 = vmul.f32 0.03125, %v58_v38 }
 0x1ce   :  { %v62_v40 = vadd.f32 1e-05, %v60_v39 }
 0x1d0   :  { %195 = vrsqrt.f32 %v62_v40 }
 0x1d6   :  { %v194_v41 = vpop.eup %193 }
 0x1d7   :  { %v65_v42 = vmul.f32 %v194_v41, %v49_v20 }
 0x1d9   :  { %v73_v46 = vmul.f32 %v168_v43, %v65_v42 }
 0x1da   :  { %v196_v44 = vpop.eup %195 }
 0x1db   :  { %v66_v45 = vmul.f32 %v196_v44, %v50_v24  ;;  %v81_v49 = vadd.f32 %v169_v47, %v73_v46 }
 0x1dd   :  { %v74_v48 = vmul.f32 %v168_v43, %v66_v45 }
 0x1df   :  { %v82_v50 = vadd.f32 %v169_v47, %v74_v48 }
 0x1e1   :  { %v83_v51 = vpack.c.bf16 %v82_v50, %v81_v49 }
 0x1e3   :  { %181 = vmatmul.mubr.msk.bf16.vlgmr.msra.gmra.mrb[0].mxu0 %vm23_vm0, %v83_v51 }
 0x2b6   :  { %v127_v52 = vpop.f32.mrb[0].mxu0 }
 0x2b7   :  { %v171_v53 = vmul.f32 -0.13333334, %v127_v52  ;;  %v182_v54 = vpop.f32.mrb[1].mxu0 }
 0x2b8   :  { %v130_v55 = vpop.f32.mrb[2].mxu0 }
 0x2b9   :  { %v138_v56 = vmul.f32 1.442695, %v171_v53  ;;  %v172_v57 = vmul.f32 -0.13333334, %v130_v55  ;;  %v183_v58 = vpop.f32.mrb[3].mxu0 }
 0x2bb   :  { %197 = vpow2.f32 %v138_v56  ;;  %v140_v59 = vmul.f32 1.442695, %v172_v57 }
 0x2bd   :  { %199 = vpow2.f32 %v140_v59 }
 0x2c5   :  { %v198_v60 = vpop.eup %197 }
 0x2c6   :  { %v142_v61 = vadd.f32 1.0, %v198_v60 }
 0x2c7   :  { %v200_v62 = vpop.eup %199 }
 0x2c8   :  { %201 = vrcp.f32 %v142_v61  ;;  %v143_v63 = vadd.f32 1.0, %v200_v62 }
 0x2ca   :  { %203 = vrcp.f32 %v143_v63 }
 0x2d2   :  { %v202_v0 = vpop.eup %201 }
 0x2d3   :  { %v148_v1 = vmul.f32 30.0, %v202_v0 }
 0x2d4   :  { %v204_v2 = vpop.eup %203 }
 0x2d5   :  { %150 = vst [vmem:[#allocation2] sm:$0xff] %v148_v1  ;;  %v149_v3 = vmul.f32 30.0, %v204_v2 }
 0x2d7   :  { %151 = vst [vmem:[#allocation2 + $0x8] sm:$0xff] %v149_v3 }
 0x2d8   :  { %216 = shalt.err (!%p213_p4)
}
 0x2d9   :  { %s217_s6 = scalar_lea.hbm %s306_s4, 256 }
 0x2da   :  { %p218_p5 = scmp.ne.s32.totalorder %s306_s4, %s217_s6  ;;  %p221_p6 = scmp.lt.u32.totalorder %s217_s6, %s306_s4 }
 0x2dc   :  { %p223_p7 = pnand %p221_p6, %p218_p5 }
 0x2de   :  { %226 = shalt.err (!%p223_p7)
}
 0x2df   :  { %s232_s11 = smov 128   ;;  %s233_s12 = smov 8  }
 0x2e0   :  { %163 = dma.vmem_to_hbm [thread:$0]  %s158_s2, 256, %s306_s4, [#allocation3], %s232_s11, %s232_s11, %s233_s12  }
 0x2e1   :  { %227 = dma.done.wait [#allocation3], 256  }
 0x2e2   :  { %228 = vsyncadd [#allocation3], 4294967040 }
 0x2e3   :  { %167 = vsyncpa [#allocation3], 1 }

// kernel: fwd.5
= control target key start
LH: loop header
LB: loop body
LE: loop exit
PB: predicated region body
PF: predicated region fallthrough
CT: control target
= control target key end

     0   :  { %s1367_s24 = smov 0   ;;  %s1533_s0 = inlined_call_operand.vmem [shape: f32[2,8,32], index: 0, kind: input, shape index: {}]   ;;  %s1534_s1 = inlined_call_operand.vmem [shape: f32[1,32], index: 1, kind: input, shape index: {}]   ;;  %s1535_s2 = inlined_call_operand.vmem [shape: f32[1,32], index: 2, kind: input, shape index: {}]   ;;  %s1536_s3 = inlined_call_operand.vmem [shape: f32[32,96], index: 3, kind: input, shape index: {}]   ;;  %s1537_s4 = inlined_call_operand.vmem [shape: f32[32,32], index: 4, kind: input, shape index: {}]   ;;  %s1538_s5 = inlined_call_operand.vmem [shape: f32[8,8], index: 5, kind: input, shape index: {}]   ;;  %s1539_s6 = inlined_call_operand.vmem [shape: f32[8,8], index: 6, kind: input, shape index: {}]   ;;  %s1540_s7 = inlined_call_operand.vmem [shape: f32[2,8,32], index: 7, kind: output, shape index: {}]  }
   0x1 LB: > { %s1160_s25 = sadd.s32 4294967295, %s1308_s24   ;;  %p1164_p0 = scmp.ge.s32.totalorder %s1308_s24, 1  ;;  %s1308_s24 = sphi %s1367_s24, %s17_s24  }
   0x2   : > { %p236_p1 = scmp.lt.s32.totalorder %s1308_s24, 3 }
   0x4   : > { %p237_p2 = pnand %p1164_p0, %p236_p1 }
   0x5   : > { %p266_p3 = scmp.lt.s32.totalorder (!%p237_p2), %s1160_s25, 1  ;;  %vm277_vm0 = vcmask (!%p237_p2), 261120   ;;  %v316_v14 = vld [vmem:[%s1536_s3] sm:$0xff] (!%p237_p2)  ;;  %v317_v15 = vld [vmem:[%s1536_s3 + $0x8] sm:$0xff] (!%p237_p2)  ;;  %v318_v16 = vld [vmem:[%s1536_s3 + $0x10] sm:$0xff] (!%p237_p2)  ;;  %v1310_v17 = vmov (!%p237_p2), 0.0  }
   0x6   : > { %240 = sbr.rel (%p237_p2) target bundleno = 2090 (0x82a), region = 48  ;;  %1203 = vmatprep.subr.bf16.mxu0 (!%p237_p2), %v1310_v17  ;;  %v320_v18 = vpack.c.bf16 (!%p237_p2), %v317_v15, %v316_v14  ;;  %v319_v19 = vld [vmem:[%s1536_s3 + $0x18] sm:$0xff] (!%p237_p2)  ;;  %vm1311_vm1 = vmmov (!%p237_p2), 0   ;;  %1211 = vmatprep.subr.mxu1 (!%p237_p2), %v1310_v17  ;;  %v1167_v25 = vld [vmem:[%s1534_s1] ss:$0 sm:$0xff] (!%p237_p2)  ;;  %s1312_s19 = smov (!%p237_p2), 80  }
   0x7   : > { %1207 = vmatprep.mubr.msk.bf16.mxu0 (!%p237_p2), %vm1311_vm1, %v1310_v17  ;;  %1213 = vmatprep.mubr.msk.f32.mxu1 (!%p237_p2), %vm1311_vm1, %v1310_v17  ;;  %v321_v20 = vpack.c.bf16 (!%p237_p2), %v319_v19, %v318_v16  ;;  %v1168_v27 = vld [vmem:[%s1535_s2] ss:$0 sm:$0xff] (!%p237_p2)  ;;  %s1313_s20 = smov (!%p237_p2), 96   ;;  %s1314_s21 = smov (!%p237_p2), 112   ;;  %vm379_vm2 = vcmask (!%p237_p2), 130048   ;;  %vm454_vm3 = vcmask (!%p237_p2), 64512  }
   0x8   : > { %1204 = vmatpush3.bf16.msra.mxu0 (!%p237_p2), %v320_v18  ;;  %v366_v41 = vld [vmem:[%s1539_s6] sm:$0xff] (!%p237_p2)  ;;  %s1315_s27 = smov (!%p237_p2), 48   ;;  %s1316_s28 = smov (!%p237_p2), 16  }
   0x9   : > { %1205 = vmatprep.subr.bf16.mxu0 (!%p237_p2), %v1310_v17  ;;  %s1318_s30 = smov (!%p237_p2), 56   ;;  %v1437_v42 = vld [vmem:[%s1538_s5] sm:$0xff] (!%p237_p2)  ;;  %s1319_s10 = smov (!%p237_p2), 40  }
   0xa   : > { %s1320_s11 = smov (!%p237_p2), 8   ;;  %s1321_s12 = smov (!%p237_p2), 24  }
   0xb   : > { %s1322_s13 = smov (!%p237_p2), 120   ;;  %s1323_s14 = smov (!%p237_p2), 88  }
   0xc   : > { %1206 = vmatpush3.bf16.msra.mxu0 (!%p237_p2), %v321_v20  ;;  %s1324_s15 = smov (!%p237_p2), 72   ;;  %s1325_s16 = smov (!%p237_p2), 104  }
   0xd   : > { %s1542_s25 = smov (!%p266_p3, %s1160_s25), 1  ;;  %1226 = vmatprep.subr.mxu0 %v1310_v17  ;;  %s1326_s17 = smov 64  }
   0xe   : > { %s1165_s26 = sshll.u32 %s1542_s25, 3 }
   0xf   : > { %s269_s29 = scalar_lea.vmem %s1533_s0, %s1165_s26  ;;  %s273_s8 = scalar_lea.vmem %s1540_s7, %s1165_s26 }
  0x10   : > { %v275_v0 = vld [vmem:[%s269_s29] sm:$0xff]  ;;  %s1317_s29 = smov 32  }
  0x11   : > { %v276_v1 = vmul.f32 %v275_v0, %v275_v0 }
  0x13   : > { %v278_v2 = vsel %vm277_vm0, %v276_v1, 0.0 }
  0x14   : > { %279 = vadd.xlane.f32.xlu0 %v278_v2 }
  0xa1   : > { %v280_v3 = vpop.xlane.xlu0 %279 }
  0xa2   : > { %v282_v4 = vmul.f32 0.03125, %v280_v3 }
  0xa4   : > { %v283_v5 = vadd.f32 1.1920929e-07, %v282_v4 }
  0xa6   : > { %1282 = vrsqrt.f32 %v283_v5 }
  0xb0   : > { %v1283_v6 = vpop.eup %1282 }
  0xb1   : > { %v1384_v7 = vmul.f32 %v1283_v6, %v275_v0 }
  0xb3   : > { %v288_v8 = vsel %vm277_vm0, %v1384_v7, 0.0 }
  0xb4   : > { %289 = vadd.xlane.f32.xlu0 %v288_v8 }
 0x141   : > { %v290_v9 = vpop.xlane.xlu0 %289 }
 0x142   : > { %v291_v10 = vmul.f32 0.03125, %v290_v9 }
 0x144   : > { %v292_v11 = vsub.f32 %v1384_v7, %v291_v10 }
 0x146   : > { %v293_v12 = vmul.f32 %v292_v11, %v292_v11 }
 0x148   : > { %v294_v13 = vsel %vm277_vm0, %v293_v12, 0.0 }
 0x149   : > { %295 = vadd.xlane.f32.xlu1 %v294_v13 }
 0x1d6   : > { %v296_v21 = vpop.xlane.xlu1 %295 }
 0x1d7   : > { %v297_v22 = vmul.f32 0.03125, %v296_v21 }
 0x1d9   : > { %v298_v23 = vadd.f32 1e-05, %v297_v22 }
 0x1db   : > { %1284 = vrsqrt.f32 %v298_v23 }
 0x1e5   : > { %v1285_v24 = vpop.eup %1284 }
 0x1e6   : > { %v300_v26 = vmul.f32 %v1285_v24, %v292_v11 }
 0x1e8   : > { %v307_v28 = vmul.f32 %v1167_v25, %v300_v26 }
 0x1ea   : > { %v314_v29 = vadd.f32 %v1168_v27, %v307_v28 }
 0x1ec   : > { %v315_v30 = vpack.c.bf16 %v314_v29, %v314_v29 }
 0x1ee   : > { %1208 = vmatmul.mubr.msk.bf16.vlgmr.msra.gmra.mrb[0].mxu0 %vm277_vm0, %v315_v30 }
 0x1ef   : > { %1228 = vmatprep.mubr.msk.f32.mxu0 %vm1311_vm1, %v1310_v17 }
 0x2c1   : > { %v1419_v31 = vpop.f32.mrb[0].mxu0 }
 0x2c2   : > { %v1209_v32 = vpop.f32.mrb[1].mxu0  ;;  %v378_v33 = vmul.f32 %v1419_v31, %v1419_v31 }
 0x2c3   : > { %v362_v34 = vpop.f32.mrb[2].mxu0 }
 0x2c4   : > { %708 = vrot.lane.b32.xlu0 %v378_v33, %s1312_s19  ;;  %390 = vrot.lane.b32.xlu1 %v378_v33, %s1313_s20  ;;  %v1210_v35 = vpop.f32.mrb[3].mxu0  ;;  %v380_v36 = vsel %vm379_vm2, %v378_v33, 0.0 }
 0x2c8   : > { %697 = vrot.lane.b32.xlu1 %v378_v33, %s1314_s21 }
 0x2e3   : > { %381 = vadd.xlane.f32.xlu0 %v380_v36 }
 0x336   : > { %v709_v37 = vpop.permute.xlu0 %708  ;;  %v391_v38 = vpop.permute.xlu1 %390 }
 0x337   : > { %v393_v39 = vsel %vm379_vm2, %v391_v38, 0.0  ;;  %v711_v40 = vsel %vm379_vm2, %v709_v37, 0.0 }
 0x338   : > { %394 = vadd.xlane.f32.xlu1 %v393_v39  ;;  %712 = vadd.xlane.f32.xlu0 %v711_v40 }
 0x33a   : > { %v698_v43 = vpop.permute.xlu1 %697 }
 0x33b   : > { %v700_v45 = vsel %vm379_vm2, %v698_v43, 0.0 }
 0x349   : > { %761 = vrot.lane.b32.xlu1 %v366_v41, %s1315_s27 }
 0x34d   : > { %735 = vrot.lane.b32.xlu1 %v366_v41, %s1316_s28 }
 0x34e   : > { %439 = vrot.lane.b32.xlu0 %v366_v41, %s1317_s29 }
 0x352   : > { %748 = vrot.lane.b32.xlu0 %v366_v41, %s1318_s30 }
 0x356   : > { %435 = vrot.lane.b32.xlu0 %v1437_v42, %s1319_s10 }
 0x35a   : > { %412 = vrot.lane.b32.xlu0 %v1437_v42, %s1320_s11 }
 0x35e   : > { %731 = vrot.lane.b32.xlu0 %v1437_v42, %s1321_s12 }
 0x362   : > { %402 = vrot.lane.b32.xlu0 %v366_v41, %s1320_s11 }
 0x370   : > { %v382_v44 = vpop.xlane.xlu0 %381 }
 0x371   : > { %v384_v46 = vmul.f32 0.0625, %v382_v44  ;;  %701 = vadd.xlane.f32.xlu1 %v700_v45 }
 0x373   : > { %v385_v47 = vadd.f32 1.1920929e-07, %v384_v46 }
 0x375   : > { %1286 = vrsqrt.f32 %v385_v47 }
 0x37f   : > { %v1287_v48 = vpop.eup %1286 }
 0x380   : > { %v387_v49 = vmul.f32 %v1287_v48, %v1419_v31 }
 0x382   : > { %v1446_v50 = vmul.f32 0.12, %v387_v49  ;;  %426 = vrot.lane.b32.xlu1 %v366_v41, %s1319_s10 }
 0x384   : > { %v416_v51 = vmul.f32 %v1446_v50, %v366_v41 }
 0x386   : > { %418 = vrot.lane.b32.xlu0 %v416_v51, %s1320_s11  ;;  %722 = vrot.lane.b32.xlu1 %v366_v41, %s1321_s12 }
 0x38a   : > { %757 = vrot.lane.b32.xlu1 %v1437_v42, %s1318_s30 }
 0x38e   : > { %422 = vrot.lane.b32.xlu1 %v1437_v42, %s1317_s29 }
 0x3c5   : > { %v395_v52 = vpop.xlane.xlu1 %394  ;;  %v713_v53 = vpop.xlane.xlu0 %712 }
 0x3c6   : > { %v396_v54 = vmul.f32 0.0625, %v395_v52  ;;  %v714_v55 = vmul.f32 0.0625, %v713_v53 }
 0x3c8   : > { %v397_v56 = vadd.f32 1.1920929e-07, %v396_v54  ;;  %v715_v57 = vadd.f32 1.1920929e-07, %v714_v55 }
 0x3c9   : > { %v440_v61 = vpop.permute.xlu0 %439  ;;  %v762_v0 = vpop.permute.xlu1 %761 }
 0x3ca   : > { %1288 = vrsqrt.f32 %v397_v56  ;;  %v400_v56 = vmul.f32 %v1446_v50, %v1437_v42 }
 0x3cb   : > { %1290 = vrsqrt.f32 %v715_v57 }
 0x3cd   : > { %v736_v2 = vpop.permute.xlu1 %735  ;;  %v749_v4 = vpop.permute.xlu0 %748 }
 0x3d1   : > { %v436_v10 = vpop.permute.xlu0 %435 }
 0x3d4   : > { %v1289_v58 = vpop.eup %1288 }
 0x3d5   : > { %v1291_v59 = vpop.eup %1290  ;;  %v399_v60 = vmul.f32 %v1289_v58, %v1419_v31  ;;  %v413_v11 = vpop.permute.xlu0 %412 }
 0x3d6   : > { %v717_v62 = vmul.f32 %v1291_v59, %v1419_v31  ;;  %v415_v23 = vmul.f32 %v413_v11, %v1446_v50 }
 0x3d7   : > { %v442_v63 = vmul.f32 %v440_v61, %v399_v60  ;;  %v438_v27 = vmul.f32 %v436_v10, %v399_v60  ;;  %v367_v61 = vlaneseq }
 0x3d8   : > { %v764_v1 = vmul.f32 %v762_v0, %v717_v62  ;;  %v751_v18 = vmul.f32 %v749_v4, %v717_v62 }
 0x3d9   : > { %444 = vrot.lane.b32.xlu1 %v442_v63, %s1320_s11  ;;  %v732_v15 = vpop.permute.xlu0 %731 }
 0x3dd   : > { %766 = vrot.lane.b32.xlu1 %v764_v1, %s1320_s11  ;;  %v403_v19 = vpop.permute.xlu0 %402 }
 0x3de   : > { %v405_v45 = vmul.f32 %v403_v19, %v1446_v50  ;;  %v370_v50 = vand.u32 127, %v367_v61  ;;  %v372_v19 = vld [vmem:[%s1537_s4] sm:$0xff] }
 0x3f8   : > { %v419_v22 = vpop.permute.xlu0 %418 }
 0x3f9   : > { %v421_v24 = vsub.f32 %v415_v23, %v419_v22  ;;  %v374_v22 = vld [vmem:[%s1537_s4 + $0x10] sm:$0xff]  ;;  %v375_v23 = vld [vmem:[%s1537_s4 + $0x18] sm:$0xff] }
 0x3fe   : > { %v702_v3 = vpop.xlane.xlu1 %701 }
 0x3ff   : > { %v703_v5 = vmul.f32 0.0625, %v702_v3 }
 0x401   : > { %v704_v6 = vadd.f32 1.1920929e-07, %v703_v5 }
 0x402   : > { %v427_v8 = vpop.permute.xlu1 %426 }
 0x403   : > { %1292 = vrsqrt.f32 %v704_v6  ;;  %v429_v9 = vmul.f32 %v427_v8, %v399_v60 }
 0x405   : > { %431 = vrot.lane.b32.xlu1 %v429_v9, %s1322_s13 }
 0x406   : > { %v723_v20 = vpop.permute.xlu1 %722 }
 0x409   : > { %744 = vrot.lane.b32.xlu1 %v1437_v42, %s1315_s27 }
 0x40a   : > { %v758_v25 = vpop.permute.xlu1 %757 }
 0x40b   : > { %v760_v30 = vmul.f32 %v758_v25, %v717_v62 }
 0x40d   : > { %v1293_v12 = vpop.eup %1292  ;;  %718 = vrot.lane.b32.xlu1 %v1437_v42, %s1316_s28  ;;  %v368_v42 = vshrl.u32 %v367_v61, 7 }
 0x40e   : > { %v706_v13 = vmul.f32 %v1293_v12, %v1419_v31  ;;  %v423_v26 = vpop.permute.xlu1 %422 }
 0x40f   : > { %v425_v34 = vmul.f32 %v423_v26, %v399_v60  ;;  %vm371_vm4 = vcmp.ge.s32.totalorder %v368_v42, %v370_v50 }
 0x410   : > { %v707_v14 = vmul.f32 0.12, %v706_v13 }
 0x412   : > { %v738_v16 = vmul.f32 %v736_v2, %v707_v14  ;;  %v725_v21 = vmul.f32 %v723_v20, %v707_v14  ;;  %v734_v38 = vmul.f32 %v732_v15, %v707_v14  ;;  %v373_v20 = vld [vmem:[%s1537_s4 + $0x8] sm:$0xff] }
 0x414   : > { %740 = vrot.lane.b32.xlu0 %v738_v16, %s1320_s11 }
 0x418   : > { %753 = vrot.lane.b32.xlu0 %v751_v18, %s1322_s13 }
 0x41c   : > { %727 = vrot.lane.b32.xlu0 %v725_v21, %s1322_s13  ;;  %v376_v21 = vpack.c.bf16 %v373_v20, %v372_v19 }
 0x420   : > { %449 = vrot.lane.b32.xlu0 %v421_v24, %s1322_s13  ;;  %v377_v24 = vpack.c.bf16 %v375_v23, %v374_v22 }
 0x44b   : > { %v445_v28 = vpop.permute.xlu1 %444 }
 0x44c   : > { %v447_v29 = vsub.f32 %v438_v27, %v445_v28 }
 0x44e   : > { %452 = vrot.lane.b32.xlu1 %v447_v29, %s1323_s14 }
 0x44f   : > { %v767_v32 = vpop.permute.xlu1 %766 }
 0x450   : > { %v769_v33 = vsub.f32 %v760_v30, %v767_v32 }
 0x452   : > { %774 = vrot.lane.b32.xlu1 %v769_v33, %s1324_s15 }
 0x477   : > { %v432_v35 = vpop.permute.xlu1 %431 }
 0x478   : > { %v434_v36 = vadd.f32 %v432_v35, %v425_v34 }
 0x47a   : > { %530 = vrot.lane.b32.xlu1 %v434_v36, %s1313_s20 }
 0x47b   : > { %v745_v37 = vpop.permute.xlu1 %744 }
 0x47c   : > { %v747_v41 = vmul.f32 %v745_v37, %v717_v62 }
 0x47f   : > { %v719_v43 = vpop.permute.xlu1 %718 }
 0x480   : > { %v721_v47 = vmul.f32 %v719_v43, %v707_v14 }
 0x486   : > { %v741_v39 = vpop.permute.xlu0 %740 }
 0x487   : > { %v743_v40 = vsub.f32 %v734_v38, %v741_v39 }
 0x489   : > { %771 = vrot.lane.b32.xlu0 %v743_v40, %s1325_s16 }
 0x48a   : > { %v754_v44 = vpop.permute.xlu0 %753 }
 0x48b   : > { %v756_v46 = vadd.f32 %v754_v44, %v747_v41 }
 0x48d   : > { %407 = vrot.lane.b32.xlu0 %v405_v45, %s1322_s13  ;;  %854 = vrot.lane.b32.xlu1 %v756_v46, %s1312_s19 }
 0x48e   : > { %v728_v48 = vpop.permute.xlu0 %727 }
 0x48f   : > { %v730_v49 = vadd.f32 %v728_v48, %v721_v47 }
 0x491   : > { %851 = vrot.lane.b32.xlu0 %v730_v49, %s1314_s21 }
 0x492   : > { %v450_v52 = vpop.permute.xlu0 %449 }
 0x4c0   : > { %v453_v51 = vpop.permute.xlu1 %452 }
 0x4c1   : > { %1212 = vmatpush3.xpose.msk.msra.mxu1 %vm454_vm3, %v453_v51 }
 0x4c2   : > { %1216 = vmatprep.subr.mxu1 %v1310_v17 }
 0x4c4   : > { %v775_v53 = vpop.permute.xlu1 %774  ;;  %1214 = vmatmul.mubr.msk.f32.vlgmr.msra.gmra.mrb[0].mxu1 %vm454_vm3, %v450_v52 }
 0x4c5   : > { %1227 = vmatpush3.xpose.msk.msra.mxu0 %vm454_vm3, %v775_v53  ;;  %1218 = vmatprep.mubr.msk.f32.mxu1 %vm1311_vm1, %v1310_v17 }
 0x4c6   : > { %1231 = vmatprep.subr.mxu0 %v1310_v17 }
 0x4ec   : > { %v531_v54 = vpop.permute.xlu1 %530 }
 0x4ed   : > { %1217 = vmatpush3.xpose.msk.msra.mxu1 %vm454_vm3, %v531_v54 }
 0x4ee   : > { %1221 = vmatprep.subr.mxu1 %v1310_v17 }
 0x4fb   : > { %v772_v55 = vpop.permute.xlu0 %771 }
 0x4fc   : > { %1229 = vmatmul.mubr.msk.f32.vlgmr.msra.gmra.mrb[4].mxu0 %vm454_vm3, %v772_v55 }
 0x4fd   : > { %1233 = vmatprep.mubr.msk.f32.mxu0 %vm1311_vm1, %v1310_v17 }
 0x4ff   : > { %v855_v57 = vpop.permute.xlu1 %854  ;;  %v408_v58 = vpop.permute.xlu0 %407 }
 0x500   : > { %v410_v59 = vadd.f32 %v408_v58, %v400_v56  ;;  %1232 = vmatpush3.xpose.msk.msra.mxu0 %vm454_vm3, %v855_v57 }
 0x501   : > { %1247 = vmatprep.subr.bf16.mxu0 %v1310_v17 }
 0x502   : > { %1219 = vmatmul.mubr.msk.f32.vlgmr.msra.gmra.mrb[0].mxu1 %vm454_vm3, %v410_v59 }
 0x503   : > { %v852_v60 = vpop.permute.xlu0 %851  ;;  %1223 = vmatprep.mubr.msk.f32.mxu1 %vm1311_vm1, %v1310_v17 }
 0x504   : > { %1234 = vmatmul.mubr.msk.f32.vlgmr.msra.gmra.mrb[4].mxu0 %vm454_vm3, %v852_v60 }
 0x505   : > { %1249 = vmatprep.mubr.msk.bf16.mxu0 %vm1311_vm1, %v1310_v17  ;;  %1248 = vmatpush3.bf16.msra.mxu0 %v376_v21 }
 0x5d5   : > { %v603_v62 = vpop.f32.mrb[0].mxu1 }
 0x5d6   : > { %v607_v63 = vsel %vm371_vm4, %v603_v62, -1e+30  ;;  %v1220_v0 = vpop.f32.mrb[1].mxu1 }
 0x5d7   : > { %v926_v1 = vpop.f32.mrb[4].mxu0  ;;  %v608_v2 = vsel %vm454_vm3, %v607_v63, -inf }
 0x5d8   : > { %v930_v3 = vsel %vm371_vm4, %v926_v1, -1e+30  ;;  %609 = vmax.xlane.f32.xlu1 %v608_v2  ;;  %v1235_v4 = vpop.f32.mrb[5].mxu0 }
 0x5d9   : > { %v931_v5 = vsel %vm454_vm3, %v930_v3, -inf }
 0x5da   : > { %932 = vmax.xlane.f32.xlu0 %v931_v5 }
 0x5e9   : > { %940 = vrot.lane.b32.xlu1 %v1419_v31, %s1315_s27 }
 0x5f0   : > { %618 = vrot.lane.b32.xlu0 %v1419_v31, %s1326_s17 }
 0x665   : > { %v610_v6 = vpop.xlane.xlu1 %609 }
 0x666   : > { %v611_v8 = vsub.f32 %v607_v63, %v610_v6 }
 0x667   : > { %v933_v9 = vpop.xlane.xlu0 %932 }
 0x668   : > { %v612_v10 = vmul.f32 1.442695, %v611_v8  ;;  %v934_v11 = vsub.f32 %v930_v3, %v933_v9 }
 0x669   : > { %v941_v15 = vpop.permute.xlu1 %940 }
 0x66a   : > { %1294 = vpow2.f32 %v612_v10  ;;  %v935_v12 = vmul.f32 1.442695, %v934_v11 }
 0x66b   : > { %v619_v13 = vpop.permute.xlu0 %618 }
 0x66c   : > { %1296 = vpow2.f32 %v935_v12  ;;  %1222 = vmatpush3.msra.mxu1 %v619_v13 }
 0x66d   : > { %1236 = vmatprep.subr.mxu1 %v1310_v17 }
 0x674   : > { %v1295_v14 = vpop.eup %1294 }
 0x675   : > { %1224 = vmatmul.mubr.msk.f32.vlgmr.msra.gmra.mrb[2].mxu1 %vm454_vm3, %v1295_v14  ;;  %v614_v16 = vsel %vm454_vm3, %v1295_v14, 0.0 }
 0x676   : > { %v1297_v18 = vpop.eup %1296  ;;  %1237 = vmatpush3.msra.mxu1 %v941_v15  ;;  %615 = vadd.xlane.f32.xlu1 %v614_v16 }
 0x677   : > { %v937_v31 = vsel %vm454_vm3, %v1297_v18, 0.0  ;;  %1238 = vmatprep.mubr.msk.f32.mxu1 %vm1311_vm1, %v1310_v17  ;;  %1241 = vmatprep.subr.bf16.mxu1 %v1310_v17 }
 0x678   : > { %938 = vadd.xlane.f32.xlu0 %v937_v31 }
 0x679   : > { %1239 = vmatmul.mubr.msk.f32.vlgmr.msra.gmra.mrb[4].mxu1 %vm454_vm3, %v1297_v18 }
 0x67a   : > { %1243 = vmatprep.mubr.msk.bf16.mxu1 %vm1311_vm1, %v1310_v17  ;;  %1242 = vmatpush3.bf16.msra.mxu1 %v377_v24 }
 0x703   : > { %v616_v17 = vpop.xlane.xlu1 %615 }
 0x704   : > { %1298 = vrcp.f32 %v616_v17 }
 0x705   : > { %v939_v25 = vpop.xlane.xlu0 %938 }
 0x706   : > { %1300 = vrcp.f32 %v939_v25 }
 0x70e   : > { %v1299_v26 = vpop.eup %1298 }
 0x710   : > { %v1301_v32 = vpop.eup %1300 }
 0x748   : > { %v690_v27 = vpop.f32.mrb[2].mxu1 }
 0x749   : > { %v695_v28 = vmul.f32 %v1299_v26, %v690_v27  ;;  %v1225_v29 = vpop.f32.mrb[3].mxu1 }
 0x74b   : > { %v696_v30 = vpack.c.bf16 %v695_v28, %v695_v28 }
 0x74c   : > { %v1012_v33 = vpop.f32.mrb[4].mxu1 }
 0x74d   : > { %v1017_v34 = vmul.f32 %v1301_v32, %v1012_v33  ;;  %v1240_v35 = vpop.f32.mrb[5].mxu1  ;;  %1250 = vmatmul.mubr.msk.bf16.vlgmr.msra.gmra.mrb[8].mxu0 %vm379_vm2, %v696_v30 }
 0x74f   : > { %v1018_v36 = vpack.c.bf16 %v1017_v34, %v1017_v34 }
 0x751   : > { %1244 = vmatmul.mubr.msk.bf16.vlgmr.msra.gmra.mrb[8].mxu1 %vm379_vm2, %v1018_v36 }
 0x820   : > { %v1099_v37 = vpop.f32.mrb[8].mxu0 }
 0x821   : > { %v1251_v38 = vpop.f32.mrb[9].mxu0 }
 0x822   : > { %v1102_v39 = vpop.f32.mrb[10].mxu0 }
 0x823   : > { %v1252_v40 = vpop.f32.mrb[11].mxu0 }
 0x824   : > { %v1056_v41 = vpop.f32.mrb[8].mxu1 }
 0x825   : > { %v1100_v43 = vadd.f32 %v1099_v37, %v1056_v41  ;;  %v1245_v44 = vpop.f32.mrb[9].mxu1 }
 0x826   : > { %v1059_v45 = vpop.f32.mrb[10].mxu1 }
 0x827   : > { %v1105_v46 = vadd.f32 %v1100_v43, %v1384_v7  ;;  %v1246_v47 = vpop.f32.mrb[11].mxu1 }
 0x829   : > { %1106 = vst.msk [vmem:[%s273_s8] sm:$0xff] %vm277_vm0, %v1105_v46 }
 0x82a PF: > { %s17_s24 = sadd.s32 1, %s1308_s24  }
 0x82b   : > { %p14_p4 = scmp.ge.s32.totalorder %s17_s24, 4  }
 0x82d   :  { %16 = sbr.rel (!%p14_p4) target bundleno = 1 (0x1), region = 78 }

// kernel: fwd.7
= control target key start
LH: loop header
LB: loop body
LE: loop exit
PB: predicated region body
PF: predicated region fallthrough
CT: control target
= control target key end

     0   :  { %s1357_s24 = smov 0   ;;  %s1524_s0 = inlined_call_operand.vmem [shape: f32[2,8,32], index: 0, kind: input, shape index: {}]   ;;  %s1525_s1 = inlined_call_operand.vmem [shape: f32[1,32], index: 1, kind: input, shape index: {}]   ;;  %s1526_s2 = inlined_call_operand.vmem [shape: f32[1,32], index: 2, kind: input, shape index: {}]   ;;  %s1527_s3 = inlined_call_operand.vmem [shape: f32[32,96], index: 3, kind: input, shape index: {}]   ;;  %s1528_s4 = inlined_call_operand.vmem [shape: f32[32,32], index: 4, kind: input, shape index: {}]   ;;  %s1529_s5 = inlined_call_operand.vmem [shape: f32[8,8], index: 5, kind: input, shape index: {}]   ;;  %s1530_s6 = inlined_call_operand.vmem [shape: f32[8,8], index: 6, kind: input, shape index: {}]   ;;  %s1531_s7 = inlined_call_operand.vmem [shape: f32[2,8,32], index: 7, kind: output, shape index: {}]  }
   0x1 LB: > { %s1152_s25 = sadd.s32 4294967295, %s1298_s24   ;;  %p1156_p0 = scmp.ge.s32.totalorder %s1298_s24, 1  ;;  %s1298_s24 = sphi %s1357_s24, %s17_s24  }
   0x2   : > { %p236_p1 = scmp.lt.s32.totalorder %s1298_s24, 3 }
   0x4   : > { %p237_p2 = pnand %p1156_p0, %p236_p1 }
   0x5   : > { %p266_p3 = scmp.lt.s32.totalorder (!%p237_p2), %s1152_s25, 1  ;;  %vm278_vm0 = vcmask (!%p237_p2), 261120   ;;  %v308_v7 = vld [vmem:[%s1527_s3] sm:$0xff] (!%p237_p2)  ;;  %v309_v8 = vld [vmem:[%s1527_s3 + $0x8] sm:$0xff] (!%p237_p2)  ;;  %v310_v9 = vld [vmem:[%s1527_s3 + $0x10] sm:$0xff] (!%p237_p2)  ;;  %v1300_v10 = vmov (!%p237_p2), 0.0  }
   0x6   : > { %240 = sbr.rel (%p237_p2) target bundleno = 1879 (0x757), region = 48  ;;  %1195 = vmatprep.subr.bf16.mxu0 (!%p237_p2), %v1300_v10  ;;  %v312_v11 = vpack.c.bf16 (!%p237_p2), %v309_v8, %v308_v7  ;;  %v311_v12 = vld [vmem:[%s1527_s3 + $0x18] sm:$0xff] (!%p237_p2)  ;;  %vm1301_vm1 = vmmov (!%p237_p2), 0   ;;  %1203 = vmatprep.subr.mxu1 (!%p237_p2), %v1300_v10  ;;  %v1159_v18 = vld [vmem:[%s1525_s1] ss:$0 sm:$0xff] (!%p237_p2)  ;;  %s1302_s19 = smov (!%p237_p2), 112  }
   0x7   : > { %1199 = vmatprep.mubr.msk.bf16.mxu0 (!%p237_p2), %vm1301_vm1, %v1300_v10  ;;  %1205 = vmatprep.mubr.msk.f32.mxu1 (!%p237_p2), %vm1301_vm1, %v1300_v10  ;;  %v313_v13 = vpack.c.bf16 (!%p237_p2), %v311_v12, %v310_v9  ;;  %v1160_v20 = vld [vmem:[%s1526_s2] ss:$0 sm:$0xff] (!%p237_p2)  ;;  %s1303_s20 = smov (!%p237_p2), 96   ;;  %s1304_s21 = smov (!%p237_p2), 80   ;;  %vm371_vm2 = vcmask (!%p237_p2), 130048   ;;  %vm446_vm3 = vcmask (!%p237_p2), 64512  }
   0x8   : > { %1196 = vmatpush3.bf16.msra.mxu0 (!%p237_p2), %v312_v11  ;;  %v358_v29 = vld [vmem:[%s1530_s6] sm:$0xff] (!%p237_p2)  ;;  %s1305_s27 = smov (!%p237_p2), 32   ;;  %s1306_s28 = smov (!%p237_p2), 16  }
   0x9   : > { %1197 = vmatprep.subr.bf16.mxu0 (!%p237_p2), %v1300_v10  ;;  %v1425_v31 = vld [vmem:[%s1529_s5] sm:$0xff] (!%p237_p2)  ;;  %s1308_s9 = smov (!%p237_p2), 40   ;;  %s1309_s10 = smov (!%p237_p2), 8  }
   0xa   : > { %s1310_s11 = smov (!%p237_p2), 24   ;;  %s1311_s12 = smov (!%p237_p2), 56  }
   0xb   : > { %s1312_s13 = smov (!%p237_p2), 120   ;;  %s1313_s14 = smov (!%p237_p2), 88  }
   0xc   : > { %1198 = vmatpush3.bf16.msra.mxu0 (!%p237_p2), %v313_v13  ;;  %s1314_s15 = smov (!%p237_p2), 72   ;;  %s1315_s16 = smov (!%p237_p2), 104  }
   0xd   : > { %s1533_s25 = smov (!%p266_p3, %s1152_s25), 1  ;;  %1218 = vmatprep.subr.mxu0 %v1300_v10  ;;  %s1316_s17 = smov 64  }
   0xe   : > { %s1157_s26 = sshll.u32 %s1533_s25, 3 }
   0xf   : > { %s269_s29 = scalar_lea.vmem %s1524_s0, %s1157_s26  ;;  %s273_s8 = scalar_lea.vmem %s1531_s7, %s1157_s26 }
  0x10   : > { %v1373_v0 = vld [vmem:[%s269_s29] sm:$0xff]  ;;  %s1307_s29 = smov 48  }
  0x11   : > { %v279_v1 = vsel %vm278_vm0, %v1373_v0, 0.0 }
  0x12   : > { %280 = vadd.xlane.f32.xlu0 %v279_v1 }
  0x9f   : > { %v281_v2 = vpop.xlane.xlu0 %280 }
  0xa0   : > { %v283_v3 = vmul.f32 0.03125, %v281_v2 }
  0xa2   : > { %v284_v4 = vsub.f32 %v1373_v0, %v283_v3 }
  0xa4   : > { %v285_v5 = vmul.f32 %v284_v4, %v284_v4 }
  0xa6   : > { %v286_v6 = vsel %vm278_vm0, %v285_v5, 0.0 }
  0xa7   : > { %287 = vadd.xlane.f32.xlu0 %v286_v6 }
 0x134   : > { %v288_v14 = vpop.xlane.xlu0 %287 }
 0x135   : > { %v289_v15 = vmul.f32 0.03125, %v288_v14 }
 0x137   : > { %v290_v16 = vadd.f32 1e-05, %v289_v15 }
 0x139   : > { %1274 = vrsqrt.f32 %v290_v16 }
 0x143   : > { %v1275_v17 = vpop.eup %1274 }
 0x144   : > { %v292_v19 = vmul.f32 %v1275_v17, %v284_v4 }
 0x146   : > { %v299_v21 = vmul.f32 %v1159_v18, %v292_v19 }
 0x148   : > { %v306_v22 = vadd.f32 %v1160_v20, %v299_v21 }
 0x14a   : > { %v307_v23 = vpack.c.bf16 %v306_v22, %v306_v22 }
 0x14c   : > { %1200 = vmatmul.mubr.msk.bf16.vlgmr.msra.gmra.mrb[0].mxu0 %vm278_vm0, %v307_v23 }
 0x14d   : > { %1220 = vmatprep.mubr.msk.f32.mxu0 %vm1301_vm1, %v1300_v10 }
 0x21f   : > { %v1408_v24 = vpop.f32.mrb[0].mxu0 }
 0x220   : > { %v1201_v25 = vpop.f32.mrb[1].mxu0  ;;  %v370_v26 = vmul.f32 %v1408_v24, %v1408_v24 }
 0x221   : > { %v354_v27 = vpop.f32.mrb[2].mxu0 }
 0x222   : > { %689 = vrot.lane.b32.xlu0 %v370_v26, %s1302_s19  ;;  %382 = vrot.lane.b32.xlu1 %v370_v26, %s1303_s20  ;;  %v1202_v28 = vpop.f32.mrb[3].mxu0  ;;  %v372_v30 = vsel %vm371_vm2, %v370_v26, 0.0 }
 0x226   : > { %700 = vrot.lane.b32.xlu1 %v370_v26, %s1304_s21 }
 0x22a   : > { %431 = vrot.lane.b32.xlu1 %v358_v29, %s1305_s27 }
 0x22e   : > { %727 = vrot.lane.b32.xlu1 %v358_v29, %s1306_s28 }
 0x241   : > { %373 = vadd.xlane.f32.xlu0 %v372_v30 }
 0x257   : > { %753 = vrot.lane.b32.xlu0 %v358_v29, %s1307_s29 }
 0x25b   : > { %427 = vrot.lane.b32.xlu0 %v1425_v31, %s1308_s9 }
 0x25f   : > { %404 = vrot.lane.b32.xlu0 %v1425_v31, %s1309_s10 }
 0x263   : > { %723 = vrot.lane.b32.xlu0 %v1425_v31, %s1310_s11 }
 0x267   : > { %394 = vrot.lane.b32.xlu0 %v358_v29, %s1309_s10 }
 0x294   : > { %v383_v32 = vpop.permute.xlu1 %382  ;;  %v690_v36 = vpop.permute.xlu0 %689 }
 0x295   : > { %v385_v33 = vsel %vm371_vm2, %v383_v32, 0.0  ;;  %v692_v37 = vsel %vm371_vm2, %v690_v36, 0.0 }
 0x296   : > { %386 = vadd.xlane.f32.xlu1 %v385_v33 }
 0x298   : > { %v701_v34 = vpop.permute.xlu1 %700 }
 0x299   : > { %v703_v35 = vsel %vm371_vm2, %v701_v34, 0.0 }
 0x29a   : > { %704 = vadd.xlane.f32.xlu1 %v703_v35 }
 0x29c   : > { %v432_v45 = vpop.permute.xlu1 %431 }
 0x29e   : > { %693 = vadd.xlane.f32.xlu1 %v692_v37 }
 0x2a0   : > { %v728_v46 = vpop.permute.xlu1 %727 }
 0x2af   : > { %418 = vrot.lane.b32.xlu1 %v358_v29, %s1308_s9 }
 0x2b3   : > { %740 = vrot.lane.b32.xlu1 %v358_v29, %s1311_s12 }
 0x2b7   : > { %714 = vrot.lane.b32.xlu1 %v358_v29, %s1310_s11 }
 0x2bb   : > { %749 = vrot.lane.b32.xlu1 %v1425_v31, %s1311_s12 }
 0x2bf   : > { %414 = vrot.lane.b32.xlu1 %v1425_v31, %s1305_s27 }
 0x2ce   : > { %v374_v38 = vpop.xlane.xlu0 %373 }
 0x2cf   : > { %v376_v39 = vmul.f32 0.0625, %v374_v38 }
 0x2d1   : > { %v377_v40 = vadd.f32 1.1920929e-07, %v376_v39 }
 0x2d2   : > { %v754_v61 = vpop.permute.xlu0 %753 }
 0x2d3   : > { %1276 = vrsqrt.f32 %v377_v40 }
 0x2d6   : > { %v428_v6 = vpop.permute.xlu0 %427 }
 0x2da   : > { %v405_v9 = vpop.permute.xlu0 %404 }
 0x2dd   : > { %v1277_v41 = vpop.eup %1276 }
 0x2de   : > { %v379_v42 = vmul.f32 %v1277_v41, %v1408_v24  ;;  %v724_v13 = vpop.permute.xlu0 %723 }
 0x2e0   : > { %v1439_v43 = vmul.f32 0.12, %v379_v42 }
 0x2e2   : > { %v408_v44 = vmul.f32 %v1439_v43, %v358_v29  ;;  %v395_v14 = vpop.permute.xlu0 %394  ;;  %v407_v15 = vmul.f32 %v405_v9, %v1439_v43 }
 0x2e3   : > { %v397_v37 = vmul.f32 %v395_v14, %v1439_v43 }
 0x2e4   : > { %410 = vrot.lane.b32.xlu0 %v408_v44, %s1309_s10 }
 0x323   : > { %v387_v47 = vpop.xlane.xlu1 %386 }
 0x324   : > { %v388_v48 = vmul.f32 0.0625, %v387_v47 }
 0x326   : > { %v389_v49 = vadd.f32 1.1920929e-07, %v388_v48 }
 0x327   : > { %v705_v50 = vpop.xlane.xlu1 %704 }
 0x328   : > { %1278 = vrsqrt.f32 %v389_v49  ;;  %v706_v51 = vmul.f32 0.0625, %v705_v50  ;;  %v392_v49 = vmul.f32 %v1439_v43, %v1425_v31 }
 0x32a   : > { %v707_v52 = vadd.f32 1.1920929e-07, %v706_v51 }
 0x32b   : > { %v694_v53 = vpop.xlane.xlu1 %693 }
 0x32c   : > { %1280 = vrsqrt.f32 %v707_v52  ;;  %v695_v54 = vmul.f32 0.0625, %v694_v53 }
 0x32e   : > { %v696_v55 = vadd.f32 1.1920929e-07, %v695_v54  ;;  %v359_v54 = vlaneseq }
 0x32f   : > { %v419_v1 = vpop.permute.xlu1 %418 }
 0x330   : > { %1282 = vrsqrt.f32 %v696_v55  ;;  %v362_v43 = vand.u32 127, %v359_v54 }
 0x332   : > { %v1279_v56 = vpop.eup %1278 }
 0x333   : > { %v391_v57 = vmul.f32 %v1279_v56, %v1408_v24  ;;  %v741_v7 = vpop.permute.xlu1 %740 }
 0x335   : > { %v434_v58 = vmul.f32 %v432_v45, %v391_v57  ;;  %v421_v3 = vmul.f32 %v419_v1, %v391_v57  ;;  %v430_v20 = vmul.f32 %v428_v6, %v391_v57 }
 0x336   : > { %v1281_v59 = vpop.eup %1280 }
 0x337   : > { %v709_v60 = vmul.f32 %v1281_v59, %v1408_v24  ;;  %436 = vrot.lane.b32.xlu1 %v434_v58, %s1309_s10  ;;  %v715_v11 = vpop.permute.xlu1 %714 }
 0x339   : > { %v756_v62 = vmul.f32 %v754_v61, %v709_v60  ;;  %v743_v8 = vmul.f32 %v741_v7, %v709_v60 }
 0x33a   : > { %v1283_v63 = vpop.eup %1282 }
 0x33b   : > { %v698_v2 = vmul.f32 %v1283_v63, %v1408_v24  ;;  %758 = vrot.lane.b32.xlu1 %v756_v62, %s1309_s10  ;;  %v750_v18 = vpop.permute.xlu1 %749 }
 0x33c   : > { %v752_v23 = vmul.f32 %v750_v18, %v709_v60 }
 0x33d   : > { %v699_v4 = vmul.f32 0.12, %v698_v2 }
 0x33f   : > { %423 = vrot.lane.b32.xlu1 %v421_v3, %s1312_s13  ;;  %v730_v5 = vmul.f32 %v728_v46, %v699_v4  ;;  %v717_v12 = vmul.f32 %v715_v11, %v699_v4  ;;  %v415_v19 = vpop.permute.xlu1 %414  ;;  %v726_v30 = vmul.f32 %v724_v13, %v699_v4  ;;  %v365_v13 = vld [vmem:[%s1528_s4 + $0x8] sm:$0xff] }
 0x340   : > { %v417_v27 = vmul.f32 %v415_v19, %v391_v57 }
 0x341   : > { %732 = vrot.lane.b32.xlu0 %v730_v5, %s1309_s10 }
 0x343   : > { %736 = vrot.lane.b32.xlu1 %v1425_v31, %s1307_s29 }
 0x345   : > { %745 = vrot.lane.b32.xlu0 %v743_v8, %s1312_s13 }
 0x347   : > { %710 = vrot.lane.b32.xlu1 %v1425_v31, %s1306_s28  ;;  %v360_v31 = vshrl.u32 %v359_v54, 7 }
 0x349   : > { %719 = vrot.lane.b32.xlu0 %v717_v12, %s1312_s13  ;;  %vm363_vm4 = vcmp.ge.s32.totalorder %v360_v31, %v362_v43  ;;  %v364_v12 = vld [vmem:[%s1528_s4] sm:$0xff] }
 0x34a   : > { %v368_v14 = vpack.c.bf16 %v365_v13, %v364_v12 }
 0x356   : > { %v411_v16 = vpop.permute.xlu0 %410 }
 0x357   : > { %v413_v17 = vsub.f32 %v407_v15, %v411_v16  ;;  %v366_v15 = vld [vmem:[%s1528_s4 + $0x10] sm:$0xff]  ;;  %v367_v16 = vld [vmem:[%s1528_s4 + $0x18] sm:$0xff] }
 0x359   : > { %441 = vrot.lane.b32.xlu0 %v413_v17, %s1312_s13  ;;  %v369_v17 = vpack.c.bf16 %v367_v16, %v366_v15 }
 0x3a9   : > { %v437_v21 = vpop.permute.xlu1 %436 }
 0x3aa   : > { %v439_v22 = vsub.f32 %v430_v20, %v437_v21 }
 0x3ac   : > { %444 = vrot.lane.b32.xlu1 %v439_v22, %s1313_s14 }
 0x3ad   : > { %v759_v25 = vpop.permute.xlu1 %758 }
 0x3ae   : > { %v761_v26 = vsub.f32 %v752_v23, %v759_v25 }
 0x3b0   : > { %766 = vrot.lane.b32.xlu1 %v761_v26, %s1314_s15 }
 0x3b1   : > { %v424_v28 = vpop.permute.xlu1 %423 }
 0x3b2   : > { %v426_v29 = vadd.f32 %v424_v28, %v417_v27 }
 0x3b3   : > { %v733_v32 = vpop.permute.xlu0 %732 }
 0x3b4   : > { %v735_v33 = vsub.f32 %v726_v30, %v733_v32  ;;  %522 = vrot.lane.b32.xlu1 %v426_v29, %s1303_s20 }
 0x3b5   : > { %v737_v34 = vpop.permute.xlu1 %736 }
 0x3b6   : > { %v739_v35 = vmul.f32 %v737_v34, %v709_v60  ;;  %763 = vrot.lane.b32.xlu0 %v735_v33, %s1315_s16 }
 0x3b7   : > { %v746_v36 = vpop.permute.xlu0 %745 }
 0x3b8   : > { %v748_v38 = vadd.f32 %v746_v36, %v739_v35 }
 0x3b9   : > { %v711_v39 = vpop.permute.xlu1 %710 }
 0x3ba   : > { %v713_v40 = vmul.f32 %v711_v39, %v699_v4  ;;  %399 = vrot.lane.b32.xlu0 %v397_v37, %s1312_s13  ;;  %846 = vrot.lane.b32.xlu1 %v748_v38, %s1304_s21 }
 0x3bb   : > { %v720_v41 = vpop.permute.xlu0 %719 }
 0x3bc   : > { %v722_v42 = vadd.f32 %v720_v41, %v713_v40 }
 0x3be   : > { %843 = vrot.lane.b32.xlu0 %v722_v42, %s1302_s19 }
 0x3cb   : > { %v442_v45 = vpop.permute.xlu0 %441 }
 0x41e   : > { %v445_v44 = vpop.permute.xlu1 %444 }
 0x41f   : > { %1204 = vmatpush3.xpose.msk.msra.mxu1 %vm446_vm3, %v445_v44 }
 0x420   : > { %1208 = vmatprep.subr.mxu1 %v1300_v10 }
 0x422   : > { %v767_v46 = vpop.permute.xlu1 %766  ;;  %1206 = vmatmul.mubr.msk.f32.vlgmr.msra.gmra.mrb[0].mxu1 %vm446_vm3, %v442_v45 }
 0x423   : > { %1219 = vmatpush3.xpose.msk.msra.mxu0 %vm446_vm3, %v767_v46  ;;  %1210 = vmatprep.mubr.msk.f32.mxu1 %vm1301_vm1, %v1300_v10 }
 0x424   : > { %1223 = vmatprep.subr.mxu0 %v1300_v10 }
 0x426   : > { %v523_v47 = vpop.permute.xlu1 %522 }
 0x427   : > { %1209 = vmatpush3.xpose.msk.msra.mxu1 %vm446_vm3, %v523_v47 }
 0x428   : > { %v764_v48 = vpop.permute.xlu0 %763  ;;  %1213 = vmatprep.subr.mxu1 %v1300_v10 }
 0x429   : > { %1221 = vmatmul.mubr.msk.f32.vlgmr.msra.gmra.mrb[4].mxu0 %vm446_vm3, %v764_v48 }
 0x42a   : > { %1225 = vmatprep.mubr.msk.f32.mxu0 %vm1301_vm1, %v1300_v10 }
 0x42c   : > { %v847_v50 = vpop.permute.xlu1 %846  ;;  %v400_v51 = vpop.permute.xlu0 %399 }
 0x42d   : > { %v402_v52 = vadd.f32 %v400_v51, %v392_v49  ;;  %1224 = vmatpush3.xpose.msk.msra.mxu0 %vm446_vm3, %v847_v50 }
 0x42e   : > { %1239 = vmatprep.subr.bf16.mxu0 %v1300_v10 }
 0x42f   : > { %1211 = vmatmul.mubr.msk.f32.vlgmr.msra.gmra.mrb[0].mxu1 %vm446_vm3, %v402_v52 }
 0x430   : > { %v844_v53 = vpop.permute.xlu0 %843  ;;  %1215 = vmatprep.mubr.msk.f32.mxu1 %vm1301_vm1, %v1300_v10 }
 0x431   : > { %1226 = vmatmul.mubr.msk.f32.vlgmr.msra.gmra.mrb[4].mxu0 %vm446_vm3, %v844_v53 }
 0x432   : > { %1241 = vmatprep.mubr.msk.bf16.mxu0 %vm1301_vm1, %v1300_v10  ;;  %1240 = vmatpush3.bf16.msra.mxu0 %v368_v14 }
 0x502   : > { %v595_v55 = vpop.f32.mrb[0].mxu1 }
 0x503   : > { %v599_v56 = vsel %vm363_vm4, %v595_v55, -1e+30  ;;  %v1212_v57 = vpop.f32.mrb[1].mxu1 }
 0x504   : > { %v918_v58 = vpop.f32.mrb[4].mxu0  ;;  %v600_v59 = vsel %vm446_vm3, %v599_v56, -inf }
 0x505   : > { %v922_v60 = vsel %vm363_vm4, %v918_v58, -1e+30  ;;  %601 = vmax.xlane.f32.xlu1 %v600_v59  ;;  %v1227_v61 = vpop.f32.mrb[5].mxu0 }
 0x506   : > { %v923_v62 = vsel %vm446_vm3, %v922_v60, -inf }
 0x507   : > { %924 = vmax.xlane.f32.xlu0 %v923_v62 }
 0x516   : > { %932 = vrot.lane.b32.xlu1 %v1408_v24, %s1307_s29 }
 0x51d   : > { %610 = vrot.lane.b32.xlu0 %v1408_v24, %s1316_s17 }
 0x592   : > { %v602_v63 = vpop.xlane.xlu1 %601 }
 0x593   : > { %v603_v1 = vsub.f32 %v599_v56, %v602_v63 }
 0x594   : > { %v925_v2 = vpop.xlane.xlu0 %924 }
 0x595   : > { %v604_v3 = vmul.f32 1.442695, %v603_v1  ;;  %v926_v4 = vsub.f32 %v922_v60, %v925_v2 }
 0x596   : > { %v933_v8 = vpop.permute.xlu1 %932 }
 0x597   : > { %1284 = vpow2.f32 %v604_v3  ;;  %v927_v5 = vmul.f32 1.442695, %v926_v4 }
 0x598   : > { %v611_v6 = vpop.permute.xlu0 %610 }
 0x599   : > { %1286 = vpow2.f32 %v927_v5  ;;  %1214 = vmatpush3.msra.mxu1 %v611_v6 }
 0x59a   : > { %1228 = vmatprep.subr.mxu1 %v1300_v10 }
 0x5a1   : > { %v1285_v7 = vpop.eup %1284 }
 0x5a2   : > { %1216 = vmatmul.mubr.msk.f32.vlgmr.msra.gmra.mrb[2].mxu1 %vm446_vm3, %v1285_v7  ;;  %v606_v9 = vsel %vm446_vm3, %v1285_v7, 0.0 }
 0x5a3   : > { %v1287_v11 = vpop.eup %1286  ;;  %1229 = vmatpush3.msra.mxu1 %v933_v8  ;;  %607 = vadd.xlane.f32.xlu1 %v606_v9 }
 0x5a4   : > { %v929_v24 = vsel %vm446_vm3, %v1287_v11, 0.0  ;;  %1230 = vmatprep.mubr.msk.f32.mxu1 %vm1301_vm1, %v1300_v10  ;;  %1233 = vmatprep.subr.bf16.mxu1 %v1300_v10 }
 0x5a5   : > { %930 = vadd.xlane.f32.xlu0 %v929_v24 }
 0x5a6   : > { %1231 = vmatmul.mubr.msk.f32.vlgmr.msra.gmra.mrb[4].mxu1 %vm446_vm3, %v1287_v11 }
 0x5a7   : > { %1235 = vmatprep.mubr.msk.bf16.mxu1 %vm1301_vm1, %v1300_v10  ;;  %1234 = vmatpush3.bf16.msra.mxu1 %v369_v17 }
 0x630   : > { %v608_v10 = vpop.xlane.xlu1 %607 }
 0x631   : > { %1288 = vrcp.f32 %v608_v10 }
 0x632   : > { %v931_v18 = vpop.xlane.xlu0 %930 }
 0x633   : > { %1290 = vrcp.f32 %v931_v18 }
 0x63b   : > { %v1289_v19 = vpop.eup %1288 }
 0x63d   : > { %v1291_v25 = vpop.eup %1290 }
 0x675   : > { %v682_v20 = vpop.f32.mrb[2].mxu1 }
 0x676   : > { %v687_v21 = vmul.f32 %v1289_v19, %v682_v20  ;;  %v1217_v22 = vpop.f32.mrb[3].mxu1 }
 0x678   : > { %v688_v23 = vpack.c.bf16 %v687_v21, %v687_v21 }
 0x679   : > { %v1004_v26 = vpop.f32.mrb[4].mxu1 }
 0x67a   : > { %v1009_v27 = vmul.f32 %v1291_v25, %v1004_v26  ;;  %v1232_v28 = vpop.f32.mrb[5].mxu1  ;;  %1242 = vmatmul.mubr.msk.bf16.vlgmr.msra.gmra.mrb[8].mxu0 %vm371_vm2, %v688_v23 }
 0x67c   : > { %v1010_v29 = vpack.c.bf16 %v1009_v27, %v1009_v27 }
 0x67e   : > { %1236 = vmatmul.mubr.msk.bf16.vlgmr.msra.gmra.mrb[8].mxu1 %vm371_vm2, %v1010_v29 }
 0x74d   : > { %v1091_v30 = vpop.f32.mrb[8].mxu0 }
 0x74e   : > { %v1243_v32 = vpop.f32.mrb[9].mxu0 }
 0x74f   : > { %v1094_v33 = vpop.f32.mrb[10].mxu0 }
 0x750   : > { %v1244_v34 = vpop.f32.mrb[11].mxu0 }
 0x751   : > { %v1048_v35 = vpop.f32.mrb[8].mxu1 }
 0x752   : > { %v1092_v36 = vadd.f32 %v1091_v30, %v1048_v35  ;;  %v1237_v37 = vpop.f32.mrb[9].mxu1 }
 0x753   : > { %v1051_v38 = vpop.f32.mrb[10].mxu1 }
 0x754   : > { %v1097_v39 = vadd.f32 %v1092_v36, %v1373_v0  ;;  %v1238_v40 = vpop.f32.mrb[11].mxu1 }
 0x756   : > { %1098 = vst.msk [vmem:[%s273_s8] sm:$0xff] %vm278_vm0, %v1097_v39 }
 0x757 PF: > { %s17_s24 = sadd.s32 1, %s1298_s24  }
 0x758   : > { %p14_p4 = scmp.ge.s32.totalorder %s17_s24, 4  }
 0x75a   :  { %16 = sbr.rel (!%p14_p4) target bundleno = 1 (0x1), region = 78 }

</bundles_post_ra>
